<compile_context>
chip_gen: v6e
topology: v6e:2x2x1
jax: 0.10.0
libtpu: 0.0.40
codegen_flags: <defaults>
</compile_context>

<pallas_src>
import jax
import jax.numpy as jnp
from jax.experimental import pallas as pl
from jax.experimental.pallas import tpu as pltpu

# ---- small synthetic SigLip2 vision config (deterministic, no checkpoint) ----
IMAGE_SIZE = 16
PATCH = 4
CHANNELS = 3
HIDDEN = 32
HEADS = 2
HEAD_DIM = HIDDEN // HEADS
ATT = HEADS * HEAD_DIM          # == HIDDEN
INTERMEDIATE = 64
NUM_LAYERS = 3                  # config.num_hidden_layers
USED_LAYERS = NUM_LAYERS - 1    # SiglipVisionModel deletes the last encoder layer
N_PATCHES = (IMAGE_SIZE // PATCH) ** 2
PATCH_DIM = CHANNELS * PATCH * PATCH
LN_EPS = 1e-6                   # SiglipVisionConfig.layer_norm_eps


# ----------------------------- fused Pallas kernel --------------------------

def _norm(x):
    """Gain/bias-free layernorm; gains/biases are folded into the next matmul."""
    mu = jnp.mean(x, axis=-1, keepdims=True)
    xc = x - mu
    var = jnp.mean(xc * xc, axis=-1, keepdims=True)
    return xc * jax.lax.rsqrt(var + LN_EPS)


def _make_tower_kernel(bb):
    """Kernel processing `bb` images (bb*N_PATCHES tokens) per grid step."""
    tokens = bb * N_PATCHES

    def kernel(p_ref, pw_ref, posb_ref,
               qkvw_ref, qkvb_ref, ow_ref, ob_ref,
               f1w_ref, f1b_ref, f2w_ref, f2b_ref, o_ref):
        # p_ref:    [bb, N, P]       patches of bb images
        # pw_ref:   [P, D]           patch-embedding weight
        # posb_ref: [N, D]           position embedding + patch-embedding bias
        # qkvw_ref: [L, D, 3*ATT]    fused QKV weight (ln1 + q-scale folded in)
        # qkvb_ref: [L, 1, 3*ATT]    fused QKV bias   (ln1 + q-scale folded in)
        # ow_ref:   [L, ATT, D]      out_proj weight  ob_ref: [L, 1, D]
        # f1w_ref:  [L, D, I] (ln2 folded)   f1b_ref: [L, 1, I]
        # f2w_ref:  [L, I, D]                f2b_ref: [L, 1, D]
        # o_ref:    [bb, N, D]

        # --- patch embedding + position embedding (one MXU matmul) ---
        patches = p_ref[...].reshape(tokens, PATCH_DIM)          # leading merge only
        x = jnp.dot(patches, pw_ref[...], preferred_element_type=jnp.float32)
        if bb == 1:
            x = x + posb_ref[...]
        else:
            x = (x.reshape(bb, N_PATCHES, HIDDEN) + posb_ref[...]
                 ).reshape(tokens, HIDDEN)

        # --- encoder layers (static unroll; hidden state stays in vregs/VMEM) ---
        for L in range(USED_LAYERS):
            # self-attention block (pre-LN, residual)
            h = _norm(x)
            qkv = jnp.dot(h, qkvw_ref[L],
                          preferred_element_type=jnp.float32) + qkvb_ref[L]  # [T, 3*ATT]

            ctx_per_img = []
            for b in range(bb):                          # static unroll, bb small
                r0 = b * N_PATCHES
                heads = []
                for hh in range(HEADS):                  # static unroll
                    c = hh * HEAD_DIM
                    q_h = qkv[r0:r0 + N_PATCHES, c:c + HEAD_DIM]           # scaled
                    k_h = qkv[r0:r0 + N_PATCHES, ATT + c:ATT + c + HEAD_DIM]
                    v_h = qkv[r0:r0 + N_PATCHES, 2 * ATT + c:2 * ATT + c + HEAD_DIM]
                    s = jax.lax.dot_general(q_h, k_h, (((1,), (1,)), ((), ())),
                                            preferred_element_type=jnp.float32)
                    s = s - jnp.max(s, axis=-1, keepdims=True)
                    p = jnp.exp(s)
                    p = p * pl.reciprocal(jnp.sum(p, axis=-1, keepdims=True),
                                          approx=True)
                    heads.append(jnp.dot(p, v_h,
                                         preferred_element_type=jnp.float32))
                ctx_per_img.append(heads[0] if HEADS == 1
                                   else jnp.concatenate(heads, axis=-1))    # [N, ATT]
            ctx = (ctx_per_img[0] if bb == 1
                   else jnp.concatenate(ctx_per_img, axis=0))               # [T, ATT]

            # single out-projection matmul over the concatenated heads
            x = x + jnp.dot(ctx, ow_ref[L],
                            preferred_element_type=jnp.float32) + ob_ref[L]

            # MLP block (pre-LN, residual; ln2 folded into fc1)
            h2 = _norm(x)
            m = jnp.dot(h2, f1w_ref[L],
                        preferred_element_type=jnp.float32) + f1b_ref[L]
            m = jax.nn.gelu(m, approximate=True)          # gelu_pytorch_tanh
            m = jnp.dot(m, f2w_ref[L],
                        preferred_element_type=jnp.float32) + f2b_ref[L]
            x = x + m

        # hidden_states[-1]: no post_layernorm, no head.
        o_ref[...] = x.reshape(bb, N_PATCHES, HIDDEN)     # leading split only

    return kernel


# ------------------------------ pallas_call glue ----------------------------

def _full_spec(shape):
    nd = len(shape)
    return pl.BlockSpec(shape, lambda s, _nd=nd: (0,) * _nd)


def siglip2_vision_tower_forward(images, packed, *, images_per_step=None):
    """images: NCHW float array [B, 3, IMAGE_SIZE, IMAGE_SIZE]."""
    B, C, H, W = images.shape
    gh, gw = H // PATCH, W // PATCH
    # Conv2d(kernel=stride=PATCH, padding=valid) == patch extraction + matmul.
    x = images.astype(jnp.float32).reshape(B, C, gh, PATCH, gw, PATCH)
    x = x.transpose(0, 2, 4, 1, 3, 5).reshape(B, gh * gw, C * PATCH * PATCH)

    if images_per_step is None:
        # Default: keep 2 parallel grid steps when possible so both v7x
        # TensorCores get work.  On single-TC v5e/v6e, pass images_per_step=B
        # to fold the whole batch into one step (no per-step overhead,
        # doubled MXU M-dim fill).
        images_per_step = B // 2 if (B >= 2 and B % 2 == 0) else 1
    bb = images_per_step
    assert B % bb == 0, (B, bb)
    steps = B // bb

    weights = (packed["patch_w"], packed["posb"],
               packed["qkv_w"], packed["qkv_b"], packed["out_w"], packed["out_b"],
               packed["fc1_w"], packed["fc1_b"], packed["fc2_w"], packed["fc2_b"])

    in_specs = [pl.BlockSpec((bb, N_PATCHES, PATCH_DIM), lambda s: (s, 0, 0))]
    in_specs += [_full_spec(w.shape) for w in weights]

    out = pl.pallas_call(
        _make_tower_kernel(bb),
        out_shape=jax.ShapeDtypeStruct((B, N_PATCHES, HIDDEN), jnp.float32),
        grid=(steps,),
        in_specs=in_specs,
        out_specs=pl.BlockSpec((bb, N_PATCHES, HIDDEN), lambda s: (s, 0, 0)),
        compiler_params=pltpu.CompilerParams(
            dimension_semantics=("parallel",)),
    )(x, *weights)
    return out.astype(images.dtype)


# ---------------------- parameter packing for the fused kernel --------------

def pack_params(params):
    """Stack per-layer weights into [L, ...] slabs, fuse Q/K/V into one
    [D, 3*ATT] matmul weight, fold layernorm gains/biases into the adjacent
    matmuls (ln1 -> qkv, ln2 -> fc1) and the attention scale into Q."""
    scale = HEAD_DIM ** -0.5
    qkv_w, qkv_b, out_w, out_b = [], [], [], []
    f1w, f1b, f2w, f2b = [], [], [], []
    for lp in params["layers"]:
        (ln1w, ln1b, qw, qb, kw, kb, vw, vb, ow, ob,
         ln2w, ln2b, w1, b1, w2, b2) = lp
        # (norm(x)*g + c) @ W + b  ==  norm(x) @ (g[:,None]*W) + (c @ W + b)
        g1 = ln1w.reshape(HIDDEN, 1)
        c1 = ln1b                                            # [1, D]
        qw_f = (g1 * qw) * scale
        qb_f = (c1 @ qw + qb) * scale
        kw_f = g1 * kw
        kb_f = c1 @ kw + kb
        vw_f = g1 * vw
        vb_f = c1 @ vw + vb
        qkv_w.append(jnp.concatenate([qw_f, kw_f, vw_f], axis=1))   # [D, 3*ATT]
        qkv_b.append(jnp.concatenate([qb_f, kb_f, vb_f], axis=1))   # [1, 3*ATT]
        out_w.append(ow)                                            # [ATT, D]
        out_b.append(ob)                                            # [1, D]
        g2 = ln2w.reshape(HIDDEN, 1)
        c2 = ln2b
        f1w.append(g2 * w1)
        f1b.append(c2 @ w1 + b1)
        f2w.append(w2)
        f2b.append(b2)
    return {
        "patch_w": params["patch_w"],                     # [P, D]
        "posb": params["pos"] + params["patch_b"],        # [N, D]
        "qkv_w": jnp.stack(qkv_w),                        # [L, D, 3*ATT]
        "qkv_b": jnp.stack(qkv_b),                        # [L, 1, 3*ATT]
        "out_w": jnp.stack(out_w),                        # [L, ATT, D]
        "out_b": jnp.stack(out_b),                        # [L, 1, D]
        "fc1_w": jnp.stack(f1w),                          # [L, D, I]
        "fc1_b": jnp.stack(f1b),                          # [L, 1, I]
        "fc2_w": jnp.stack(f2w),                          # [L, I, D]
        "fc2_b": jnp.stack(f2b),                          # [L, 1, D]
    }


# ------------------------- deterministic parameter init ---------------------

def init_params(key):
    def nrm(k, shape, scale=0.02):
        return scale * jax.random.normal(k, shape, dtype=jnp.float32)

    keys = iter(jax.random.split(key, 3 + USED_LAYERS * 12))
    params = {
        # conv weight [D, C, p, p] flattened to [P, D] with P = C*p*p (c,ph,pw order)
        "patch_w": nrm(next(keys), (PATCH_DIM, HIDDEN)),
        "patch_b": nrm(next(keys), (1, HIDDEN)),
        "pos": nrm(next(keys), (N_PATCHES, HIDDEN)),
        "layers": [],
    }
    for _ in range(USED_LAYERS):
        layer = (
            jnp.ones((1, HIDDEN), jnp.float32),            # ln1 weight
            jnp.zeros((1, HIDDEN), jnp.float32),           # ln1 bias
            nrm(next(keys), (HIDDEN, HIDDEN)),             # q_proj W (in, out)
            nrm(next(keys), (1, HIDDEN)),                  # q_proj b
            nrm(next(keys), (HIDDEN, HIDDEN)),             # k_proj W
            nrm(next(keys), (1, HIDDEN)),                  # k_proj b
            nrm(next(keys), (HIDDEN, HIDDEN)),             # v_proj W
            nrm(next(keys), (1, HIDDEN)),                  # v_proj b
            nrm(next(keys), (HIDDEN, HIDDEN)),             # out_proj W
            nrm(next(keys), (1, HIDDEN)),                  # out_proj b
            jnp.ones((1, HIDDEN), jnp.float32),            # ln2 weight
            jnp.zeros((1, HIDDEN), jnp.float32),           # ln2 bias
            nrm(next(keys), (HIDDEN, INTERMEDIATE)),       # fc1 W
            nrm(next(keys), (1, INTERMEDIATE)),            # fc1 b
            nrm(next(keys), (INTERMEDIATE, HIDDEN)),       # fc2 W
            nrm(next(keys), (1, HIDDEN)),                  # fc2 b
        )
        params["layers"].append(layer)
    return params


if __name__ == "__main__":
    images = jax.random.normal(jax.random.PRNGKey(0),
                               (2, CHANNELS, IMAGE_SIZE, IMAGE_SIZE),
                               dtype=jnp.float32)
    params = init_params(jax.random.PRNGKey(1))
    packed = pack_params(params)

    out = siglip2_vision_tower_forward(images, packed)
    out = jax.block_until_ready(out)

    assert out.shape == (2, N_PATCHES, HIDDEN), out.shape
    assert out.dtype == images.dtype
    assert bool(jnp.all(jnp.isfinite(out)))
    print("KERNEL_OK")
</pallas_src>

<mosaic_0001>
module attributes {stable_mosaic.version = 11 : i64} {
  func.func @kernel(%arg0: i32, %arg1: memref<1x16x48xf32, #tpu.memory_space<vmem>>, %arg2: memref<48x32xf32, #tpu.memory_space<vmem>>, %arg3: memref<16x32xf32, #tpu.memory_space<vmem>>, %arg4: memref<2x32x96xf32, #tpu.memory_space<vmem>>, %arg5: memref<2x1x96xf32, #tpu.memory_space<vmem>>, %arg6: memref<2x32x32xf32, #tpu.memory_space<vmem>>, %arg7: memref<2x1x32xf32, #tpu.memory_space<vmem>>, %arg8: memref<2x32x64xf32, #tpu.memory_space<vmem>>, %arg9: memref<2x1x64xf32, #tpu.memory_space<vmem>>, %arg10: memref<2x64x32xf32, #tpu.memory_space<vmem>>, %arg11: memref<2x1x32xf32, #tpu.memory_space<vmem>>, %arg12: memref<1x16x32xf32, #tpu.memory_space<vmem>>) attributes {dimension_semantics = [#tpu.dimension_semantics<parallel>], iteration_bounds = array<i64: 2>, scalar_prefetch = 0 : i64, scratch_operands = 0 : i64, tpu.core_type = #tpu.core_type<tc>, window_params = [{transform_indices = @transform_0, window_bounds = array<i64: 1, 16, 48>}, {pipeline_mode = #tpu.pipeline_mode<synchronous>, transform_indices = @transform_1, window_bounds = array<i64: 48, 32>}, {pipeline_mode = #tpu.pipeline_mode<synchronous>, transform_indices = @transform_2, window_bounds = array<i64: 16, 32>}, {pipeline_mode = #tpu.pipeline_mode<synchronous>, transform_indices = @transform_3, window_bounds = array<i64: 2, 32, 96>}, {pipeline_mode = #tpu.pipeline_mode<synchronous>, transform_indices = @transform_4, window_bounds = array<i64: 2, 1, 96>}, {pipeline_mode = #tpu.pipeline_mode<synchronous>, transform_indices = @transform_5, window_bounds = array<i64: 2, 32, 32>}, {pipeline_mode = #tpu.pipeline_mode<synchronous>, transform_indices = @transform_6, window_bounds = array<i64: 2, 1, 32>}, {pipeline_mode = #tpu.pipeline_mode<synchronous>, transform_indices = @transform_7, window_bounds = array<i64: 2, 32, 64>}, {pipeline_mode = #tpu.pipeline_mode<synchronous>, transform_indices = @transform_8, window_bounds = array<i64: 2, 1, 64>}, {pipeline_mode = #tpu.pipeline_mode<synchronous>, transform_indices = @transform_9, window_bounds = array<i64: 2, 64, 32>}, {pipeline_mode = #tpu.pipeline_mode<synchronous>, transform_indices = @transform_10, window_bounds = array<i64: 2, 1, 32>}, {transform_indices = @transform_11, window_bounds = array<i64: 1, 16, 32>}]} {
    %c0 = arith.constant 0 : index
    %c0_0 = arith.constant 0 : index
    %c0_1 = arith.constant 0 : index
    %0 = vector.load %arg1[%c0, %c0_0, %c0_1] : memref<1x16x48xf32, #tpu.memory_space<vmem>>, vector<1x16x48xf32>
    %1 = vector.shape_cast %0 : vector<1x16x48xf32> to vector<16x48xf32>
    %c0_2 = arith.constant 0 : index
    %c0_3 = arith.constant 0 : index
    %2 = vector.load %arg2[%c0_2, %c0_3] : memref<48x32xf32, #tpu.memory_space<vmem>>, vector<48x32xf32>
    %cst = arith.constant dense<0.000000e+00> : vector<16x32xf32>
    %3 = tpu.matmul %1, %2, %cst {dimension_numbers = #tpu.dot_dimension_numbers<[1], [0], [0], [1], [0, 0, 1, 1], [], []>} : vector<16x48xf32>, vector<48x32xf32>, vector<16x32xf32> -> vector<16x32xf32>
    %c0_4 = arith.constant 0 : index
    %c0_5 = arith.constant 0 : index
    %4 = vector.load %arg3[%c0_4, %c0_5] : memref<16x32xf32, #tpu.memory_space<vmem>>, vector<16x32xf32>
    %5 = arith.addf %3, %4 : vector<16x32xf32>
    %cst_6 = arith.constant dense<0.000000e+00> : vector<16xf32>
    %6 = vector.multi_reduction <add>, %5, %cst_6 [1] : vector<16x32xf32> to vector<16xf32>
    %7 = vector.shape_cast %6 : vector<16xf32> to vector<16x1xf32>
    %cst_7 = arith.constant 3.200000e+01 : f32
    %8 = vector.broadcast %cst_7 : f32 to vector<16x1xf32>
    %9 = arith.divf %7, %8 : vector<16x1xf32>
    %10 = vector.broadcast %9 : vector<16x1xf32> to vector<16x32xf32>
    %11 = arith.subf %5, %10 : vector<16x32xf32>
    %12 = arith.mulf %11, %11 : vector<16x32xf32>
    %cst_8 = arith.constant dense<0.000000e+00> : vector<16xf32>
    %13 = vector.multi_reduction <add>, %12, %cst_8 [1] : vector<16x32xf32> to vector<16xf32>
    %14 = vector.shape_cast %13 : vector<16xf32> to vector<16x1xf32>
    %cst_9 = arith.constant 3.200000e+01 : f32
    %15 = vector.broadcast %cst_9 : f32 to vector<16x1xf32>
    %16 = arith.divf %14, %15 : vector<16x1xf32>
    %cst_10 = arith.constant 9.99999997E-7 : f32
    %17 = vector.broadcast %cst_10 : f32 to vector<16x1xf32>
    %18 = arith.addf %16, %17 : vector<16x1xf32>
    %19 = math.rsqrt %18 : vector<16x1xf32>
    %20 = vector.broadcast %19 : vector<16x1xf32> to vector<16x32xf32>
    %21 = arith.mulf %11, %20 : vector<16x32xf32>
    %c0_11 = arith.constant 0 : index
    %c0_12 = arith.constant 0 : index
    %c0_13 = arith.constant 0 : index
    %22 = vector.load %arg4[%c0_11, %c0_12, %c0_13] : memref<2x32x96xf32, #tpu.memory_space<vmem>>, vector<1x32x96xf32>
    %23 = vector.shape_cast %22 : vector<1x32x96xf32> to vector<32x96xf32>
    %cst_14 = arith.constant dense<0.000000e+00> : vector<16x96xf32>
    %24 = tpu.matmul %21, %23, %cst_14 {dimension_numbers = #tpu.dot_dimension_numbers<[1], [0], [0], [1], [0, 0, 1, 1], [], []>} : vector<16x32xf32>, vector<32x96xf32>, vector<16x96xf32> -> vector<16x96xf32>
    %c0_15 = arith.constant 0 : index
    %c0_16 = arith.constant 0 : index
    %c0_17 = arith.constant 0 : index
    %25 = vector.load %arg5[%c0_15, %c0_16, %c0_17] : memref<2x1x96xf32, #tpu.memory_space<vmem>>, vector<1x1x96xf32>
    %26 = vector.shape_cast %25 : vector<1x1x96xf32> to vector<1x96xf32>
    %27 = vector.broadcast %26 : vector<1x96xf32> to vector<16x96xf32>
    %28 = arith.addf %24, %27 : vector<16x96xf32>
    %29 = vector.extract_strided_slice %28 {offsets = [0, 0], sizes = [16, 16], strides = [1, 1]} : vector<16x96xf32> to vector<16x16xf32>
    %30 = vector.extract_strided_slice %28 {offsets = [0, 32], sizes = [16, 16], strides = [1, 1]} : vector<16x96xf32> to vector<16x16xf32>
    %31 = vector.extract_strided_slice %28 {offsets = [0, 64], sizes = [16, 16], strides = [1, 1]} : vector<16x96xf32> to vector<16x16xf32>
    %cst_18 = arith.constant dense<0.000000e+00> : vector<16x16xf32>
    %32 = tpu.matmul %29, %30, %cst_18 {dimension_numbers = #tpu.dot_dimension_numbers<[1], [1], [0], [0], [0, 0, 1, 0], [], []>} : vector<16x16xf32>, vector<16x16xf32>, vector<16x16xf32> -> vector<16x16xf32>
    %cst_19 = arith.constant dense<0xFF800000> : vector<16xf32>
    %33 = vector.multi_reduction <maximumf>, %32, %cst_19 [1] : vector<16x16xf32> to vector<16xf32>
    %34 = vector.shape_cast %33 : vector<16xf32> to vector<16x1xf32>
    %35 = vector.broadcast %34 : vector<16x1xf32> to vector<16x16xf32>
    %36 = arith.subf %32, %35 : vector<16x16xf32>
    %37 = math.exp %36 : vector<16x16xf32>
    %cst_20 = arith.constant dense<0.000000e+00> : vector<16xf32>
    %38 = vector.multi_reduction <add>, %37, %cst_20 [1] : vector<16x16xf32> to vector<16xf32>
    %39 = vector.shape_cast %38 : vector<16xf32> to vector<16x1xf32>
    %40 = tpu.reciprocal %39 {approx = true} : vector<16x1xf32> -> vector<16x1xf32>
    %41 = vector.broadcast %40 : vector<16x1xf32> to vector<16x16xf32>
    %42 = arith.mulf %37, %41 : vector<16x16xf32>
    %cst_21 = arith.constant dense<0.000000e+00> : vector<16x16xf32>
    %43 = tpu.matmul %42, %31, %cst_21 {dimension_numbers = #tpu.dot_dimension_numbers<[1], [0], [0], [1], [0, 0, 1, 1], [], []>} : vector<16x16xf32>, vector<16x16xf32>, vector<16x16xf32> -> vector<16x16xf32>
    %44 = vector.extract_strided_slice %28 {offsets = [0, 16], sizes = [16, 16], strides = [1, 1]} : vector<16x96xf32> to vector<16x16xf32>
    %45 = vector.extract_strided_slice %28 {offsets = [0, 48], sizes = [16, 16], strides = [1, 1]} : vector<16x96xf32> to vector<16x16xf32>
    %46 = vector.extract_strided_slice %28 {offsets = [0, 80], sizes = [16, 16], strides = [1, 1]} : vector<16x96xf32> to vector<16x16xf32>
    %cst_22 = arith.constant dense<0.000000e+00> : vector<16x16xf32>
    %47 = tpu.matmul %44, %45, %cst_22 {dimension_numbers = #tpu.dot_dimension_numbers<[1], [1], [0], [0], [0, 0, 1, 0], [], []>} : vector<16x16xf32>, vector<16x16xf32>, vector<16x16xf32> -> vector<16x16xf32>
    %cst_23 = arith.constant dense<0xFF800000> : vector<16xf32>
    %48 = vector.multi_reduction <maximumf>, %47, %cst_23 [1] : vector<16x16xf32> to vector<16xf32>
    %49 = vector.shape_cast %48 : vector<16xf32> to vector<16x1xf32>
    %50 = vector.broadcast %49 : vector<16x1xf32> to vector<16x16xf32>
    %51 = arith.subf %47, %50 : vector<16x16xf32>
    %52 = math.exp %51 : vector<16x16xf32>
    %cst_24 = arith.constant dense<0.000000e+00> : vector<16xf32>
    %53 = vector.multi_reduction <add>, %52, %cst_24 [1] : vector<16x16xf32> to vector<16xf32>
    %54 = vector.shape_cast %53 : vector<16xf32> to vector<16x1xf32>
    %55 = tpu.reciprocal %54 {approx = true} : vector<16x1xf32> -> vector<16x1xf32>
    %56 = vector.broadcast %55 : vector<16x1xf32> to vector<16x16xf32>
    %57 = arith.mulf %52, %56 : vector<16x16xf32>
    %cst_25 = arith.constant dense<0.000000e+00> : vector<16x16xf32>
    %58 = tpu.matmul %57, %46, %cst_25 {dimension_numbers = #tpu.dot_dimension_numbers<[1], [0], [0], [1], [0, 0, 1, 1], [], []>} : vector<16x16xf32>, vector<16x16xf32>, vector<16x16xf32> -> vector<16x16xf32>
    %59 = tpu.concatenate %43, %58 in 1 : vector<16x16xf32>, vector<16x16xf32> -> vector<16x32xf32>
    %c0_26 = arith.constant 0 : index
    %c0_27 = arith.constant 0 : index
    %c0_28 = arith.constant 0 : index
    %60 = vector.load %arg6[%c0_26, %c0_27, %c0_28] : memref<2x32x32xf32, #tpu.memory_space<vmem>>, vector<1x32x32xf32>
    %61 = vector.shape_cast %60 : vector<1x32x32xf32> to vector<32x32xf32>
    %cst_29 = arith.constant dense<0.000000e+00> : vector<16x32xf32>
    %62 = tpu.matmul %59, %61, %cst_29 {dimension_numbers = #tpu.dot_dimension_numbers<[1], [0], [0], [1], [0, 0, 1, 1], [], []>} : vector<16x32xf32>, vector<32x32xf32>, vector<16x32xf32> -> vector<16x32xf32>
    %63 = arith.addf %5, %62 : vector<16x32xf32>
    %c0_30 = arith.constant 0 : index
    %c0_31 = arith.constant 0 : index
    %c0_32 = arith.constant 0 : index
    %64 = vector.load %arg7[%c0_30, %c0_31, %c0_32] : memref<2x1x32xf32, #tpu.memory_space<vmem>>, vector<1x1x32xf32>
    %65 = vector.shape_cast %64 : vector<1x1x32xf32> to vector<1x32xf32>
    %66 = vector.broadcast %65 : vector<1x32xf32> to vector<16x32xf32>
    %67 = arith.addf %63, %66 : vector<16x32xf32>
    %cst_33 = arith.constant dense<0.000000e+00> : vector<16xf32>
    %68 = vector.multi_reduction <add>, %67, %cst_33 [1] : vector<16x32xf32> to vector<16xf32>
    %69 = vector.shape_cast %68 : vector<16xf32> to vector<16x1xf32>
    %cst_34 = arith.constant 3.200000e+01 : f32
    %70 = vector.broadcast %cst_34 : f32 to vector<16x1xf32>
    %71 = arith.divf %69, %70 : vector<16x1xf32>
    %72 = vector.broadcast %71 : vector<16x1xf32> to vector<16x32xf32>
    %73 = arith.subf %67, %72 : vector<16x32xf32>
    %74 = arith.mulf %73, %73 : vector<16x32xf32>
    %cst_35 = arith.constant dense<0.000000e+00> : vector<16xf32>
    %75 = vector.multi_reduction <add>, %74, %cst_35 [1] : vector<16x32xf32> to vector<16xf32>
    %76 = vector.shape_cast %75 : vector<16xf32> to vector<16x1xf32>
    %cst_36 = arith.constant 3.200000e+01 : f32
    %77 = vector.broadcast %cst_36 : f32 to vector<16x1xf32>
    %78 = arith.divf %76, %77 : vector<16x1xf32>
    %cst_37 = arith.constant 9.99999997E-7 : f32
    %79 = vector.broadcast %cst_37 : f32 to vector<16x1xf32>
    %80 = arith.addf %78, %79 : vector<16x1xf32>
    %81 = math.rsqrt %80 : vector<16x1xf32>
    %82 = vector.broadcast %81 : vector<16x1xf32> to vector<16x32xf32>
    %83 = arith.mulf %73, %82 : vector<16x32xf32>
    %c0_38 = arith.constant 0 : index
    %c0_39 = arith.constant 0 : index
    %c0_40 = arith.constant 0 : index
    %84 = vector.load %arg8[%c0_38, %c0_39, %c0_40] : memref<2x32x64xf32, #tpu.memory_space<vmem>>, vector<1x32x64xf32>
    %85 = vector.shape_cast %84 : vector<1x32x64xf32> to vector<32x64xf32>
    %cst_41 = arith.constant dense<0.000000e+00> : vector<16x64xf32>
    %86 = tpu.matmul %83, %85, %cst_41 {dimension_numbers = #tpu.dot_dimension_numbers<[1], [0], [0], [1], [0, 0, 1, 1], [], []>} : vector<16x32xf32>, vector<32x64xf32>, vector<16x64xf32> -> vector<16x64xf32>
    %c0_42 = arith.constant 0 : index
    %c0_43 = arith.constant 0 : index
    %c0_44 = arith.constant 0 : index
    %87 = vector.load %arg9[%c0_42, %c0_43, %c0_44] : memref<2x1x64xf32, #tpu.memory_space<vmem>>, vector<1x1x64xf32>
    %88 = vector.shape_cast %87 : vector<1x1x64xf32> to vector<1x64xf32>
    %89 = vector.broadcast %88 : vector<1x64xf32> to vector<16x64xf32>
    %90 = arith.addf %86, %89 : vector<16x64xf32>
    %91 = arith.mulf %90, %90 : vector<16x64xf32>
    %92 = arith.mulf %90, %91 : vector<16x64xf32>
    %cst_45 = arith.constant 4.471500e-02 : f32
    %93 = vector.broadcast %cst_45 : f32 to vector<16x64xf32>
    %94 = arith.mulf %93, %92 : vector<16x64xf32>
    %95 = arith.addf %90, %94 : vector<16x64xf32>
    %cst_46 = arith.constant 0.797884583 : f32
    %96 = vector.broadcast %cst_46 : f32 to vector<16x64xf32>
    %97 = arith.mulf %96, %95 : vector<16x64xf32>
    %98 = math.tanh %97 : vector<16x64xf32>
    %cst_47 = arith.constant 1.000000e+00 : f32
    %99 = vector.broadcast %cst_47 : f32 to vector<16x64xf32>
    %100 = arith.addf %99, %98 : vector<16x64xf32>
    %cst_48 = arith.constant 5.000000e-01 : f32
    %101 = vector.broadcast %cst_48 : f32 to vector<16x64xf32>
    %102 = arith.mulf %101, %100 : vector<16x64xf32>
    %103 = arith.mulf %90, %102 : vector<16x64xf32>
    %c0_49 = arith.constant 0 : index
    %c0_50 = arith.constant 0 : index
    %c0_51 = arith.constant 0 : index
    %104 = vector.load %arg10[%c0_49, %c0_50, %c0_51] : memref<2x64x32xf32, #tpu.memory_space<vmem>>, vector<1x64x32xf32>
    %105 = vector.shape_cast %104 : vector<1x64x32xf32> to vector<64x32xf32>
    %cst_52 = arith.constant dense<0.000000e+00> : vector<16x32xf32>
    %106 = tpu.matmul %103, %105, %cst_52 {dimension_numbers = #tpu.dot_dimension_numbers<[1], [0], [0], [1], [0, 0, 1, 1], [], []>} : vector<16x64xf32>, vector<64x32xf32>, vector<16x32xf32> -> vector<16x32xf32>
    %c0_53 = arith.constant 0 : index
    %c0_54 = arith.constant 0 : index
    %c0_55 = arith.constant 0 : index
    %107 = vector.load %arg11[%c0_53, %c0_54, %c0_55] : memref<2x1x32xf32, #tpu.memory_space<vmem>>, vector<1x1x32xf32>
    %108 = vector.shape_cast %107 : vector<1x1x32xf32> to vector<1x32xf32>
    %109 = vector.broadcast %108 : vector<1x32xf32> to vector<16x32xf32>
    %110 = arith.addf %106, %109 : vector<16x32xf32>
    %111 = arith.addf %67, %110 : vector<16x32xf32>
    %cst_56 = arith.constant dense<0.000000e+00> : vector<16xf32>
    %112 = vector.multi_reduction <add>, %111, %cst_56 [1] : vector<16x32xf32> to vector<16xf32>
    %113 = vector.shape_cast %112 : vector<16xf32> to vector<16x1xf32>
    %cst_57 = arith.constant 3.200000e+01 : f32
    %114 = vector.broadcast %cst_57 : f32 to vector<16x1xf32>
    %115 = arith.divf %113, %114 : vector<16x1xf32>
    %116 = vector.broadcast %115 : vector<16x1xf32> to vector<16x32xf32>
    %117 = arith.subf %111, %116 : vector<16x32xf32>
    %118 = arith.mulf %117, %117 : vector<16x32xf32>
    %cst_58 = arith.constant dense<0.000000e+00> : vector<16xf32>
    %119 = vector.multi_reduction <add>, %118, %cst_58 [1] : vector<16x32xf32> to vector<16xf32>
    %120 = vector.shape_cast %119 : vector<16xf32> to vector<16x1xf32>
    %cst_59 = arith.constant 3.200000e+01 : f32
    %121 = vector.broadcast %cst_59 : f32 to vector<16x1xf32>
    %122 = arith.divf %120, %121 : vector<16x1xf32>
    %cst_60 = arith.constant 9.99999997E-7 : f32
    %123 = vector.broadcast %cst_60 : f32 to vector<16x1xf32>
    %124 = arith.addf %122, %123 : vector<16x1xf32>
    %125 = math.rsqrt %124 : vector<16x1xf32>
    %126 = vector.broadcast %125 : vector<16x1xf32> to vector<16x32xf32>
    %127 = arith.mulf %117, %126 : vector<16x32xf32>
    %c1 = arith.constant 1 : index
    %c0_61 = arith.constant 0 : index
    %c0_62 = arith.constant 0 : index
    %128 = vector.load %arg4[%c1, %c0_61, %c0_62] : memref<2x32x96xf32, #tpu.memory_space<vmem>>, vector<1x32x96xf32>
    %129 = vector.shape_cast %128 : vector<1x32x96xf32> to vector<32x96xf32>
    %cst_63 = arith.constant dense<0.000000e+00> : vector<16x96xf32>
    %130 = tpu.matmul %127, %129, %cst_63 {dimension_numbers = #tpu.dot_dimension_numbers<[1], [0], [0], [1], [0, 0, 1, 1], [], []>} : vector<16x32xf32>, vector<32x96xf32>, vector<16x96xf32> -> vector<16x96xf32>
    %c1_64 = arith.constant 1 : index
    %c0_65 = arith.constant 0 : index
    %c0_66 = arith.constant 0 : index
    %131 = vector.load %arg5[%c1_64, %c0_65, %c0_66] : memref<2x1x96xf32, #tpu.memory_space<vmem>>, vector<1x1x96xf32>
    %132 = vector.shape_cast %131 : vector<1x1x96xf32> to vector<1x96xf32>
    %133 = vector.broadcast %132 : vector<1x96xf32> to vector<16x96xf32>
    %134 = arith.addf %130, %133 : vector<16x96xf32>
    %135 = vector.extract_strided_slice %134 {offsets = [0, 0], sizes = [16, 16], strides = [1, 1]} : vector<16x96xf32> to vector<16x16xf32>
    %136 = vector.extract_strided_slice %134 {offsets = [0, 32], sizes = [16, 16], strides = [1, 1]} : vector<16x96xf32> to vector<16x16xf32>
    %137 = vector.extract_strided_slice %134 {offsets = [0, 64], sizes = [16, 16], strides = [1, 1]} : vector<16x96xf32> to vector<16x16xf32>
    %cst_67 = arith.constant dense<0.000000e+00> : vector<16x16xf32>
    %138 = tpu.matmul %135, %136, %cst_67 {dimension_numbers = #tpu.dot_dimension_numbers<[1], [1], [0], [0], [0, 0, 1, 0], [], []>} : vector<16x16xf32>, vector<16x16xf32>, vector<16x16xf32> -> vector<16x16xf32>
    %cst_68 = arith.constant dense<0xFF800000> : vector<16xf32>
    %139 = vector.multi_reduction <maximumf>, %138, %cst_68 [1] : vector<16x16xf32> to vector<16xf32>
    %140 = vector.shape_cast %139 : vector<16xf32> to vector<16x1xf32>
    %141 = vector.broadcast %140 : vector<16x1xf32> to vector<16x16xf32>
    %142 = arith.subf %138, %141 : vector<16x16xf32>
    %143 = math.exp %142 : vector<16x16xf32>
    %cst_69 = arith.constant dense<0.000000e+00> : vector<16xf32>
    %144 = vector.multi_reduction <add>, %143, %cst_69 [1] : vector<16x16xf32> to vector<16xf32>
    %145 = vector.shape_cast %144 : vector<16xf32> to vector<16x1xf32>
    %146 = tpu.reciprocal %145 {approx = true} : vector<16x1xf32> -> vector<16x1xf32>
    %147 = vector.broadcast %146 : vector<16x1xf32> to vector<16x16xf32>
    %148 = arith.mulf %143, %147 : vector<16x16xf32>
    %cst_70 = arith.constant dense<0.000000e+00> : vector<16x16xf32>
    %149 = tpu.matmul %148, %137, %cst_70 {dimension_numbers = #tpu.dot_dimension_numbers<[1], [0], [0], [1], [0, 0, 1, 1], [], []>} : vector<16x16xf32>, vector<16x16xf32>, vector<16x16xf32> -> vector<16x16xf32>
    %150 = vector.extract_strided_slice %134 {offsets = [0, 16], sizes = [16, 16], strides = [1, 1]} : vector<16x96xf32> to vector<16x16xf32>
    %151 = vector.extract_strided_slice %134 {offsets = [0, 48], sizes = [16, 16], strides = [1, 1]} : vector<16x96xf32> to vector<16x16xf32>
    %152 = vector.extract_strided_slice %134 {offsets = [0, 80], sizes = [16, 16], strides = [1, 1]} : vector<16x96xf32> to vector<16x16xf32>
    %cst_71 = arith.constant dense<0.000000e+00> : vector<16x16xf32>
    %153 = tpu.matmul %150, %151, %cst_71 {dimension_numbers = #tpu.dot_dimension_numbers<[1], [1], [0], [0], [0, 0, 1, 0], [], []>} : vector<16x16xf32>, vector<16x16xf32>, vector<16x16xf32> -> vector<16x16xf32>
    %cst_72 = arith.constant dense<0xFF800000> : vector<16xf32>
    %154 = vector.multi_reduction <maximumf>, %153, %cst_72 [1] : vector<16x16xf32> to vector<16xf32>
    %155 = vector.shape_cast %154 : vector<16xf32> to vector<16x1xf32>
    %156 = vector.broadcast %155 : vector<16x1xf32> to vector<16x16xf32>
    %157 = arith.subf %153, %156 : vector<16x16xf32>
    %158 = math.exp %157 : vector<16x16xf32>
    %cst_73 = arith.constant dense<0.000000e+00> : vector<16xf32>
    %159 = vector.multi_reduction <add>, %158, %cst_73 [1] : vector<16x16xf32> to vector<16xf32>
    %160 = vector.shape_cast %159 : vector<16xf32> to vector<16x1xf32>
    %161 = tpu.reciprocal %160 {approx = true} : vector<16x1xf32> -> vector<16x1xf32>
    %162 = vector.broadcast %161 : vector<16x1xf32> to vector<16x16xf32>
    %163 = arith.mulf %158, %162 : vector<16x16xf32>
    %cst_74 = arith.constant dense<0.000000e+00> : vector<16x16xf32>
    %164 = tpu.matmul %163, %152, %cst_74 {dimension_numbers = #tpu.dot_dimension_numbers<[1], [0], [0], [1], [0, 0, 1, 1], [], []>} : vector<16x16xf32>, vector<16x16xf32>, vector<16x16xf32> -> vector<16x16xf32>
    %165 = tpu.concatenate %149, %164 in 1 : vector<16x16xf32>, vector<16x16xf32> -> vector<16x32xf32>
    %c1_75 = arith.constant 1 : index
    %c0_76 = arith.constant 0 : index
    %c0_77 = arith.constant 0 : index
    %166 = vector.load %arg6[%c1_75, %c0_76, %c0_77] : memref<2x32x32xf32, #tpu.memory_space<vmem>>, vector<1x32x32xf32>
    %167 = vector.shape_cast %166 : vector<1x32x32xf32> to vector<32x32xf32>
    %cst_78 = arith.constant dense<0.000000e+00> : vector<16x32xf32>
    %168 = tpu.matmul %165, %167, %cst_78 {dimension_numbers = #tpu.dot_dimension_numbers<[1], [0], [0], [1], [0, 0, 1, 1], [], []>} : vector<16x32xf32>, vector<32x32xf32>, vector<16x32xf32> -> vector<16x32xf32>
    %169 = arith.addf %111, %168 : vector<16x32xf32>
    %c1_79 = arith.constant 1 : index
    %c0_80 = arith.constant 0 : index
    %c0_81 = arith.constant 0 : index
    %170 = vector.load %arg7[%c1_79, %c0_80, %c0_81] : memref<2x1x32xf32, #tpu.memory_space<vmem>>, vector<1x1x32xf32>
    %171 = vector.shape_cast %170 : vector<1x1x32xf32> to vector<1x32xf32>
    %172 = vector.broadcast %171 : vector<1x32xf32> to vector<16x32xf32>
    %173 = arith.addf %169, %172 : vector<16x32xf32>
    %cst_82 = arith.constant dense<0.000000e+00> : vector<16xf32>
    %174 = vector.multi_reduction <add>, %173, %cst_82 [1] : vector<16x32xf32> to vector<16xf32>
    %175 = vector.shape_cast %174 : vector<16xf32> to vector<16x1xf32>
    %cst_83 = arith.constant 3.200000e+01 : f32
    %176 = vector.broadcast %cst_83 : f32 to vector<16x1xf32>
    %177 = arith.divf %175, %176 : vector<16x1xf32>
    %178 = vector.broadcast %177 : vector<16x1xf32> to vector<16x32xf32>
    %179 = arith.subf %173, %178 : vector<16x32xf32>
    %180 = arith.mulf %179, %179 : vector<16x32xf32>
    %cst_84 = arith.constant dense<0.000000e+00> : vector<16xf32>
    %181 = vector.multi_reduction <add>, %180, %cst_84 [1] : vector<16x32xf32> to vector<16xf32>
    %182 = vector.shape_cast %181 : vector<16xf32> to vector<16x1xf32>
    %cst_85 = arith.constant 3.200000e+01 : f32
    %183 = vector.broadcast %cst_85 : f32 to vector<16x1xf32>
    %184 = arith.divf %182, %183 : vector<16x1xf32>
    %cst_86 = arith.constant 9.99999997E-7 : f32
    %185 = vector.broadcast %cst_86 : f32 to vector<16x1xf32>
    %186 = arith.addf %184, %185 : vector<16x1xf32>
    %187 = math.rsqrt %186 : vector<16x1xf32>
    %188 = vector.broadcast %187 : vector<16x1xf32> to vector<16x32xf32>
    %189 = arith.mulf %179, %188 : vector<16x32xf32>
    %c1_87 = arith.constant 1 : index
    %c0_88 = arith.constant 0 : index
    %c0_89 = arith.constant 0 : index
    %190 = vector.load %arg8[%c1_87, %c0_88, %c0_89] : memref<2x32x64xf32, #tpu.memory_space<vmem>>, vector<1x32x64xf32>
    %191 = vector.shape_cast %190 : vector<1x32x64xf32> to vector<32x64xf32>
    %cst_90 = arith.constant dense<0.000000e+00> : vector<16x64xf32>
    %192 = tpu.matmul %189, %191, %cst_90 {dimension_numbers = #tpu.dot_dimension_numbers<[1], [0], [0], [1], [0, 0, 1, 1], [], []>} : vector<16x32xf32>, vector<32x64xf32>, vector<16x64xf32> -> vector<16x64xf32>
    %c1_91 = arith.constant 1 : index
    %c0_92 = arith.constant 0 : index
    %c0_93 = arith.constant 0 : index
    %193 = vector.load %arg9[%c1_91, %c0_92, %c0_93] : memref<2x1x64xf32, #tpu.memory_space<vmem>>, vector<1x1x64xf32>
    %194 = vector.shape_cast %193 : vector<1x1x64xf32> to vector<1x64xf32>
    %195 = vector.broadcast %194 : vector<1x64xf32> to vector<16x64xf32>
    %196 = arith.addf %192, %195 : vector<16x64xf32>
    %197 = arith.mulf %196, %196 : vector<16x64xf32>
    %198 = arith.mulf %196, %197 : vector<16x64xf32>
    %cst_94 = arith.constant 4.471500e-02 : f32
    %199 = vector.broadcast %cst_94 : f32 to vector<16x64xf32>
    %200 = arith.mulf %199, %198 : vector<16x64xf32>
    %201 = arith.addf %196, %200 : vector<16x64xf32>
    %cst_95 = arith.constant 0.797884583 : f32
    %202 = vector.broadcast %cst_95 : f32 to vector<16x64xf32>
    %203 = arith.mulf %202, %201 : vector<16x64xf32>
    %204 = math.tanh %203 : vector<16x64xf32>
    %cst_96 = arith.constant 1.000000e+00 : f32
    %205 = vector.broadcast %cst_96 : f32 to vector<16x64xf32>
    %206 = arith.addf %205, %204 : vector<16x64xf32>
    %cst_97 = arith.constant 5.000000e-01 : f32
    %207 = vector.broadcast %cst_97 : f32 to vector<16x64xf32>
    %208 = arith.mulf %207, %206 : vector<16x64xf32>
    %209 = arith.mulf %196, %208 : vector<16x64xf32>
    %c1_98 = arith.constant 1 : index
    %c0_99 = arith.constant 0 : index
    %c0_100 = arith.constant 0 : index
    %210 = vector.load %arg10[%c1_98, %c0_99, %c0_100] : memref<2x64x32xf32, #tpu.memory_space<vmem>>, vector<1x64x32xf32>
    %211 = vector.shape_cast %210 : vector<1x64x32xf32> to vector<64x32xf32>
    %cst_101 = arith.constant dense<0.000000e+00> : vector<16x32xf32>
    %212 = tpu.matmul %209, %211, %cst_101 {dimension_numbers = #tpu.dot_dimension_numbers<[1], [0], [0], [1], [0, 0, 1, 1], [], []>} : vector<16x64xf32>, vector<64x32xf32>, vector<16x32xf32> -> vector<16x32xf32>
    %c1_102 = arith.constant 1 : index
    %c0_103 = arith.constant 0 : index
    %c0_104 = arith.constant 0 : index
    %213 = vector.load %arg11[%c1_102, %c0_103, %c0_104] : memref<2x1x32xf32, #tpu.memory_space<vmem>>, vector<1x1x32xf32>
    %214 = vector.shape_cast %213 : vector<1x1x32xf32> to vector<1x32xf32>
    %215 = vector.broadcast %214 : vector<1x32xf32> to vector<16x32xf32>
    %216 = arith.addf %212, %215 : vector<16x32xf32>
    %217 = arith.addf %173, %216 : vector<16x32xf32>
    %218 = vector.shape_cast %217 : vector<16x32xf32> to vector<1x16x32xf32>
    %c0_105 = arith.constant 0 : index
    %c0_106 = arith.constant 0 : index
    %c0_107 = arith.constant 0 : index
    %219 = vector.load %arg12[%c0_105, %c0_106, %c0_107] : memref<1x16x32xf32, #tpu.memory_space<vmem>>, vector<1x16x32xf32>
    tpu.vector_store %arg12[%c0_105, %c0_106, %c0_107], %218 {strides = array<i32>} : memref<1x16x32xf32, #tpu.memory_space<vmem>>, vector<1x16x32xf32>,
    return
  }
  func.func @transform_0(%arg0: i32) -> (i32, i32, i32) {
    %c0_i32 = arith.constant 0 : i32
    %c0_i32_0 = arith.constant 0 : i32
    %c0_i32_1 = arith.constant 0 : i32
    return %arg0, %c0_i32, %c0_i32_0 : i32, i32, i32
  }
  func.func @transform_1(%arg0: i32) -> (i32, i32) {
    %c0_i32 = arith.constant 0 : i32
    %c0_i32_0 = arith.constant 0 : i32
    %c0_i32_1 = arith.constant 0 : i32
    return %c0_i32, %c0_i32_0 : i32, i32
  }
  func.func @transform_2(%arg0: i32) -> (i32, i32) {
    %c0_i32 = arith.constant 0 : i32
    %c0_i32_0 = arith.constant 0 : i32
    %c0_i32_1 = arith.constant 0 : i32
    return %c0_i32, %c0_i32_0 : i32, i32
  }
  func.func @transform_3(%arg0: i32) -> (i32, i32, i32) {
    %c0_i32 = arith.constant 0 : i32
    %c0_i32_0 = arith.constant 0 : i32
    %c0_i32_1 = arith.constant 0 : i32
    %c0_i32_2 = arith.constant 0 : i32
    return %c0_i32, %c0_i32_0, %c0_i32_1 : i32, i32, i32
  }
  func.func @transform_4(%arg0: i32) -> (i32, i32, i32) {
    %c0_i32 = arith.constant 0 : i32
    %c0_i32_0 = arith.constant 0 : i32
    %c0_i32_1 = arith.constant 0 : i32
    %c0_i32_2 = arith.constant 0 : i32
    return %c0_i32, %c0_i32_0, %c0_i32_1 : i32, i32, i32
  }
  func.func @transform_5(%arg0: i32) -> (i32, i32, i32) {
    %c0_i32 = arith.constant 0 : i32
    %c0_i32_0 = arith.constant 0 : i32
    %c0_i32_1 = arith.constant 0 : i32
    %c0_i32_2 = arith.constant 0 : i32
    return %c0_i32, %c0_i32_0, %c0_i32_1 : i32, i32, i32
  }
  func.func @transform_6(%arg0: i32) -> (i32, i32, i32) {
    %c0_i32 = arith.constant 0 : i32
    %c0_i32_0 = arith.constant 0 : i32
    %c0_i32_1 = arith.constant 0 : i32
    %c0_i32_2 = arith.constant 0 : i32
    return %c0_i32, %c0_i32_0, %c0_i32_1 : i32, i32, i32
  }
  func.func @transform_7(%arg0: i32) -> (i32, i32, i32) {
    %c0_i32 = arith.constant 0 : i32
    %c0_i32_0 = arith.constant 0 : i32
    %c0_i32_1 = arith.constant 0 : i32
    %c0_i32_2 = arith.constant 0 : i32
    return %c0_i32, %c0_i32_0, %c0_i32_1 : i32, i32, i32
  }
  func.func @transform_8(%arg0: i32) -> (i32, i32, i32) {
    %c0_i32 = arith.constant 0 : i32
    %c0_i32_0 = arith.constant 0 : i32
    %c0_i32_1 = arith.constant 0 : i32
    %c0_i32_2 = arith.constant 0 : i32
    return %c0_i32, %c0_i32_0, %c0_i32_1 : i32, i32, i32
  }
  func.func @transform_9(%arg0: i32) -> (i32, i32, i32) {
    %c0_i32 = arith.constant 0 : i32
    %c0_i32_0 = arith.constant 0 : i32
    %c0_i32_1 = arith.constant 0 : i32
    %c0_i32_2 = arith.constant 0 : i32
    return %c0_i32, %c0_i32_0, %c0_i32_1 : i32, i32, i32
  }
  func.func @transform_10(%arg0: i32) -> (i32, i32, i32) {
    %c0_i32 = arith.constant 0 : i32
    %c0_i32_0 = arith.constant 0 : i32
    %c0_i32_1 = arith.constant 0 : i32
    %c0_i32_2 = arith.constant 0 : i32
    return %c0_i32, %c0_i32_0, %c0_i32_1 : i32, i32, i32
  }
  func.func @transform_11(%arg0: i32) -> (i32, i32, i32) {
    %c0_i32 = arith.constant 0 : i32
    %c0_i32_0 = arith.constant 0 : i32
    %c0_i32_1 = arith.constant 0 : i32
    return %arg0, %c0_i32, %c0_i32_0 : i32, i32, i32
  }
}

</mosaic_0001>

<bundles_post_ra>
// kernel: tpu_custom_call.1
= control target key start
LH: loop header
LB: loop body
LE: loop exit
PB: predicated region body
PF: predicated region fallthrough
CT: control target
= control target key end

     0   :  { %16 = vsyncpa [#allocation3], 0  ;;  %s3649_s0 = inlined_call_operand.vmem [shape: f32[2,16,48], index: 0, kind: input, shape index: {}]   ;;  %s3650_s1 = inlined_call_operand.vmem [shape: f32[48,32], index: 1, kind: input, shape index: {}]   ;;  %s3651_s2 = inlined_call_operand.hbm [shape: f32[16,32], index: 2, kind: input, shape index: {}]   ;;  %s3652_s3 = inlined_call_operand.vmem [shape: f32[2,32,96], index: 3, kind: input, shape index: {}]   ;;  %s3653_s4 = inlined_call_operand.hbm [shape: f32[2,1,96], index: 4, kind: input, shape index: {}]   ;;  %s3654_s5 = inlined_call_operand.vmem [shape: f32[2,32,32], index: 5, kind: input, shape index: {}]   ;;  %s3655_s6 = inlined_call_operand.hbm [shape: f32[2,1,32], index: 6, kind: input, shape index: {}]   ;;  %s3656_s7 = inlined_call_operand.vmem [shape: f32[2,32,64], index: 7, kind: input, shape index: {}]   ;;  %s3657_s8 = inlined_call_operand.hbm [shape: f32[2,1,64], index: 8, kind: input, shape index: {}]   ;;  %s3658_s9 = inlined_call_operand.vmem [shape: f32[2,64,32], index: 9, kind: input, shape index: {}]   ;;  %s3659_s10 = inlined_call_operand.vmem [shape: f32[2,1,32], index: 10, kind: input, shape index: {}]   ;;  %s3660_s11 = inlined_call_operand.hbm [shape: f32[2,16,32], index: 11, kind: output, shape index: {}]  }
   0x1   :  { %17 = vsyncpa [#allocation6], 0 }
   0x2   :  { %18 = vsyncpa [#allocation9], 0 }
   0x3   :  { %19 = vsyncpa [#allocation4], 0 }
   0x4   :  { %21 = vsyncpa [#allocation4 + $0x1], 0  ;;  %s3146_s17 = smov 0   ;;  %s3148_s18 = smov 0  }
   0x5   :  { %s3150_s19 = smov 0   ;;  %s3152_s20 = smov 0  }
   0x6 LB: > { %3671 = sst [smem:[#allocation15_spill]] %s3063_s19  ;;  %s3167_s21 = sadd.s32 4294967295, %s3067_s20   ;;  %s3067_s20 = sphi %s3152_s20, %s3687_s20   ;;  %s3063_s19 = sphi %s3150_s19, %s3689_s19   ;;  %s3059_s18 = sphi %s3148_s18, %s3691_s18   ;;  %s3055_s17 = sphi %s3146_s17, %s3690_s17  }
   0x7   : > { %s2379_s22 = sadd.s32 4294967294, %s3067_s20   ;;  %s3171_s23 = sadd.s32 1, %s3067_s20  }
   0x8   : > { %3672 = sst [smem:[#allocation16_spill]] %s3171_s23  ;;  %s270_s24 = sadd.s32 1, %s3063_s19 }
   0x9   : > { %s267_s25 = ssub.s32 %s3067_s20, %s3171_s23  ;;  %p280_p0 = scmp.ne.s32.totalorder %s3063_s19, %s3059_s18 }
   0xa   : > { %p268_p1 = scmp.eq.s32.totalorder %s267_s25, 0  ;;  %p281_p2 = scmp.eq.s32.totalorder %s3167_s21, 1 }
   0xb   : > { %p286_p3 = scmp.ne.s32.totalorder %s3059_s18, %s3055_s17  ;;  %p287_p4 = scmp.eq.s32.totalorder %s2379_s22, 1 }
   0xc   : > { %s3182_s26 = scalar_select %p268_p1, %s3063_s19, %s270_s24  }
   0xd   : > { %p3184_p5 = por %p281_p2, %p280_p0  ;;  %p3188_p6 = por %p287_p4, %p286_p3 }
   0xe   : > { %3673 = sst [smem:[#allocation17_spill]] %s3182_s26  ;;  %p2380_p7 = scmp.ge.s32.totalorder %s3067_s20, 1 }
   0xf   : > { %p294_p8 = scmp.lt.s32.totalorder %s3067_s20, 3  ;;  %p3668_p9 = scmp.eq.s32.totalorder %s3167_s21, 0 }
  0x10   : > { %s3069_s30 = smov [#allocation5]   ;;  %s3070_s14 = smov [#allocation2]  }
  0x11   : > { %p3195_p10 = pnand %p2380_p7, %p294_p8  ;;  %s325_s12 = sshll.u32 %s3069_s30, 4  ;;  %s326_s12 = int_to_ptr.vmem [resolvable:$true] %s325_s12 }
  0x12   : > { %s309_s15 = sshll.u32 %s3070_s14, 4  ;;  %s2902_s16 = scalar_lea.vmem %s326_s12, 32  ;;  %s310_s15 = int_to_ptr.vmem [resolvable:$true] %s309_s15 }
  0x13   : > { %p2761_p11 = pneg %p3195_p10  ;;  %p2903_p0 = scmp.ne.s32.totalorder %s326_s12, %s2902_s16 }
  0x14   : > { %p2910_p3 = scmp.lt.s32.totalorder %s326_s12, %s326_s12  ;;  %p2911_p4 = scmp.lt.s32.totalorder %s2902_s16, %s2902_s16 }
  0x15   : > { %p3203_p12 = pnand %p3668_p9, %p2761_p11 }
  0x16   : > { %p2912_p7 = por %p2911_p4, %p2910_p3 }
  0x17   : > { %p2893_p13 = pneg %p3203_p12 }
  0x19   : > { %p2905_p1 = pnand %p2903_p0, %p2893_p13 }
  0x1b   : > { %p2906_p2 = pneg %p2905_p1 }
  0x1d   : > { %p2913_p8 = pnand %p2912_p7, %p2906_p2 }
  0x1f   : > { %2916 = shalt.err (!%p2913_p8)
}
  0x20   : > { %s3664_s22 = smov 16   ;;  %s3666_s24 = smov 1  }
  0x21   : > { %2767 = dma.hbm_to_vmem [thread:$0]  (!%p3203_p12), %s3653_s4, 32, %s326_s12, [#allocation6], %s3664_s22, %s3664_s22, %s3666_s24  }
  0x22   : > { %s2928_s14 = scalar_lea.vmem %s310_s15, 256  ;;  %p2936_p2 = scmp.lt.s32.totalorder %s310_s15, %s310_s15 }
  0x23   : > { %p2929_p11 = scmp.ne.s32.totalorder %s310_s15, %s2928_s14  ;;  %p2937_p3 = scmp.lt.s32.totalorder %s2928_s14, %s2928_s14 }
  0x25   : > { %p2931_p0 = pnand %p2929_p11, %p2893_p13  ;;  %p2938_p4 = por %p2937_p3, %p2936_p2 }
  0x27   : > { %p2932_p1 = pneg %p2931_p0 }
  0x29   : > { %p2939_p7 = pnand %p2938_p4, %p2932_p1 }
  0x2b   : > { %2942 = shalt.err (!%p2939_p7)
}
  0x2c   : > { %s3073_s16 = smov 128   ;;  %s3074_s26 = smov 8  }
  0x2d   : > { %2764 = dma.hbm_to_vmem [thread:$0]  (!%p3203_p12), %s3651_s2, 256, %s310_s15, [#allocation3], %s3073_s16, %s3073_s16, %s3074_s26  }
  0x2e   : > { %s3075_s12 = smov [#allocation7]   ;;  %s3076_s30 = smov [#allocation8]  }
  0x2f   : > { %s341_s25 = sshll.u32 %s3075_s12, 4  ;;  %s357_s22 = sshll.u32 %s3076_s30, 4  ;;  %s342_s25 = int_to_ptr.vmem [resolvable:$true] %s341_s25  ;;  %s358_s22 = int_to_ptr.vmem [resolvable:$true] %s357_s22 }
  0x30   : > { %s2954_s24 = scalar_lea.vmem %s342_s25, 32  ;;  %p2962_p1 = scmp.lt.s32.totalorder %s342_s25, %s342_s25 }
  0x31   : > { %p2955_p8 = scmp.ne.s32.totalorder %s342_s25, %s2954_s24  ;;  %p2963_p2 = scmp.lt.s32.totalorder %s2954_s24, %s2954_s24 }
  0x33   : > { %p2957_p11 = pnand %p2955_p8, %p2893_p13  ;;  %p2964_p3 = por %p2963_p2, %p2962_p1 }
  0x35   : > { %p2958_p0 = pneg %p2957_p11 }
  0x37   : > { %p2965_p4 = pnand %p2964_p3, %p2958_p0 }
  0x39   : > { %2968 = shalt.err (!%p2965_p4)
}
  0x3a   : > { %s3678_s19 = smov 1   ;;  %s3679_s23 = smov 16  }
  0x3b   : > { %2770 = dma.hbm_to_vmem [thread:$0]  (!%p3203_p12), %s3655_s6, 32, %s342_s25, [#allocation6], %s3679_s23, %s3679_s23, %s3678_s19  }
  0x3c   : > { %s2980_s14 = scalar_lea.vmem %s358_s22, 32  ;;  %p2988_p9 = scmp.lt.s32.totalorder %s358_s22, %s358_s22 }
  0x3d   : > { %p2981_p7 = scmp.ne.s32.totalorder %s358_s22, %s2980_s14  ;;  %p2989_p1 = scmp.lt.s32.totalorder %s2980_s14, %s2980_s14 }
  0x3f   : > { %p2983_p8 = pnand %p2981_p7, %p2893_p13  ;;  %p2990_p0 = por %p2989_p1, %p2988_p9 }
  0x41   : > { %p2984_p11 = pneg %p2983_p8 }
  0x43   : > { %p2991_p2 = pnand %p2990_p0, %p2984_p11 }
  0x45   : > { %2994 = shalt.err (!%p2991_p2)
}
  0x46   : > { %2773 = dma.hbm_to_vmem [thread:$0]  (!%p3203_p12), %s3657_s8, 32, %s358_s22, [#allocation9], %s3679_s23, %s3679_s23, %s3678_s19  }
  0x47   : > { %387 = sbr.rel (%p3195_p10) target bundleno = 5597 (0x15dd), region = 64  ;;  %p3680_p13 = scmp.eq.s32.totalorder (!%p3195_p10), %s3167_s21, 0 }
  0x4c   : > { %3038 = dma.done.wait (%p3680_p13), [#allocation3], 256   ;;  %p3681_p3 = pmov %p3680_p13 }
  0x4e   : > { %3040 = vsyncadd (%p3681_p3), [#allocation3], 4294967040  ;;  %p3682_p9 = pmov %p3681_p3 }
  0x4f   : > { %p3683_p4 = pmov %p3681_p3 }
  0x50   : > { %3042 = dma.done.wait (%p3682_p9), [#allocation6], 64  }
  0x51   : > { %3044 = vsyncadd (%p3683_p4), [#allocation6], 4294967232  ;;  %p3684_p7 = pmov %p3681_p3 }
  0x52   : > { %p3685_p12 = pmov %p3681_p3 }
  0x53   : > { %3046 = dma.done.wait (%p3684_p7), [#allocation9], 32  }
  0x54   : > { %3048 = vsyncadd (%p3685_p12), [#allocation9], 4294967264  ;;  %p439_p10 = scmp.lt.s32.totalorder %s3167_s21, 1  ;;  %v451_v0 = vld [vmem:[%s3650_s1 + $0x28] sm:$0xff]  ;;  %v450_v1 = vld [vmem:[%s3650_s1 + $0x20] sm:$0xff]  ;;  %vm454_vm0 = vcmask 392192  }
  0x55   : > { %2568 = vmatprep.subr.mxu0 %v451_v0  ;;  %v449_v2 = vld [vmem:[%s3650_s1 + $0x18] sm:$0xff]  ;;  %v448_v4 = vld [vmem:[%s3650_s1 + $0x10] sm:$0xff]  ;;  %v447_v5 = vld [vmem:[%s3650_s1 + $0x8] sm:$0xff]  ;;  %vm536_vm1 = vcmask 261120   ;;  %vm662_vm2 = vcmask 130048   ;;  %s3077_s16 = smov 96  }
  0x56   : > { %s440_s29 = scalar_select %p439_p10, %s3167_s21, 1  ;;  %2569 = vmatpush3.msra.mxu0 %v451_v0  ;;  %v446_v6 = vld [vmem:[%s3650_s1] sm:$0xff]  ;;  %v453_v10 = vld [vmem:[#allocation2 + $0x8] sm:$0xff]  ;;  %v567_v26 = vld [vmem:[%s3652_s3 + $0x18] sm:$0xff]  ;;  %vm1312_vm3 = vcmask 523264  }
  0x57   : > { %2570 = vmatprep.subr.mxu0 %v450_v1  ;;  %v452_v9 = vld [vmem:[#allocation2] sm:$0xff]  ;;  %v566_v27 = vld [vmem:[%s3652_s3 + $0x10] sm:$0xff]  ;;  %v565_v28 = vld [vmem:[%s3652_s3 + $0x8] sm:$0xff]  ;;  %s3080_s22 = smov 112   ;;  %s3081_s12 = smov 48  }
  0x58   : > { %s2470_s13 = sshll.u32 %s440_s29, 4  ;;  %2571 = vmatpush3.msra.mxu0 %v450_v1  ;;  %v564_v29 = vld [vmem:[%s3652_s3] sm:$0xff]  ;;  %v2396_v40 = vld [vmem:[#allocation5] ss:$0 sm:$0xff]  ;;  %s3078_s29 = smov 64  }
  0x59   : > { %s443_s25 = scalar_lea.vmem %s3649_s0, %s2470_s13  ;;  %2572 = vmatprep.subr.mxu0 %v449_v2  ;;  %s3079_s13 = smov 80  }
  0x5a   : > { %v444_v3 = vld [vmem:[%s443_s25] sm:$0xff]  ;;  %2573 = vmatpush3.msra.mxu0 %v449_v2  ;;  %v445_v7 = vld [vmem:[%s443_s25 + $0x8] sm:$0xff]  ;;  %s3669_s25 = smov 16   ;;  %s3686_s15 = smov 16  }
  0x5b   : > { %2580 = vmatprep.mubr.msk.f32.mxu0 %vm454_vm0, %v444_v3  ;;  %2574 = vmatprep.subr.mxu0 %v448_v4  ;;  %s436_s26 = sand.u32 1, %s3059_s18   ;;  %s3083_s19 = smov [#allocation10]  }
  0x5c   : > { %2575 = vmatpush3.msra.mxu0 %v448_v4  ;;  %s2999_s23 = sshll.u32 %s3083_s19, 4  ;;  %s3000_s23 = int_to_ptr.vmem [resolvable:$false] %s2999_s23 }
  0x5d   : > { %2576 = vmatprep.subr.mxu0 %v447_v5 }
  0x5e   : > { %2577 = vmatpush3.msra.mxu0 %v447_v5 }
  0x5f   : > { %2578 = vmatprep.subr.mxu0 %v446_v6 }
  0x60   : > { %2579 = vmatpush3.msra.mxu0 %v446_v6 }
  0x61   : > { %2581 = vmatmul.mubr.msk.f32.vlgmr.msra.gmra.mxu0 %vm454_vm0, %v445_v7  ;;  %2583 = vmatprep.subr.mxu0 %v567_v26 }
  0x62   : > { %2584 = vmatpush3.msra.mxu0 %v567_v26 }
  0x63   : > { %2585 = vmatprep.subr.mxu0 %v566_v27 }
  0x64   : > { %2586 = vmatpush3.msra.mxu0 %v566_v27 }
  0x65   : > { %2587 = vmatprep.subr.mxu0 %v565_v28 }
  0x66   : > { %2588 = vmatpush3.msra.mxu0 %v565_v28 }
  0x67   : > { %2589 = vmatprep.subr.mxu0 %v564_v29 }
  0x68   : > { %2590 = vmatpush3.msra.mxu0 %v564_v29 }
 0x121   : > { %v2582_v8 = vpop.f32.mrf.mxu0 }
 0x122   : > { %v3291_v13 = vadd.f32 %v2582_v8, %v453_v10 }
 0x123   : > { %v527_v11 = vpop.f32.mrf.mxu0 }
 0x124   : > { %v3289_v12 = vadd.f32 %v527_v11, %v452_v9  ;;  %v540_v15 = vsel %vm536_vm1, %v3291_v13, 0.0 }
 0x126   : > { %v537_v14 = vsel %vm536_vm1, %v3289_v12, 0.0 }
 0x127   : > { %538 = vadd.xlane.f32.xlu0 %v537_v14 }
 0x12b   : > { %541 = vadd.xlane.f32.xlu0 %v540_v15 }
 0x1b0   : > { %v539_v16 = vpop.xlane.xlu0 %538 }
 0x1b1   : > { %v544_v17 = vmul.f32 0.03125, %v539_v16 }
 0x1b3   : > { %v546_v18 = vsub.f32 %v3289_v12, %v544_v17 }
 0x1b4   : > { %v542_v19 = vpop.xlane.xlu0 %541 }
 0x1b5   : > { %v545_v20 = vmul.f32 0.03125, %v542_v19  ;;  %v548_v21 = vmul.f32 %v546_v18, %v546_v18 }
 0x1b7   : > { %v547_v22 = vsub.f32 %v3291_v13, %v545_v20  ;;  %v550_v23 = vsel %vm536_vm1, %v548_v21, 0.0 }
 0x1b8   : > { %551 = vadd.xlane.f32.xlu1 %v550_v23 }
 0x1b9   : > { %v549_v24 = vmul.f32 %v547_v22, %v547_v22 }
 0x1bb   : > { %v553_v25 = vsel %vm536_vm1, %v549_v24, 0.0 }
 0x1bc   : > { %554 = vadd.xlane.f32.xlu1 %v553_v25 }
 0x241   : > { %v552_v30 = vpop.xlane.xlu1 %551 }
 0x242   : > { %v556_v31 = vmul.f32 0.03125, %v552_v30 }
 0x244   : > { %v558_v32 = vadd.f32 1e-06, %v556_v31 }
 0x245   : > { %v555_v33 = vpop.xlane.xlu1 %554 }
 0x246   : > { %2835 = vrsqrt.f32 %v558_v32  ;;  %v557_v34 = vmul.f32 0.03125, %v555_v33 }
 0x248   : > { %v559_v35 = vadd.f32 1e-06, %v557_v34 }
 0x24a   : > { %2837 = vrsqrt.f32 %v559_v35  ;;  %v1068_v35 = vld [vmem:[%s3654_s5 + $0x18] sm:$0xff] }
 0x253   : > { %v2836_v36 = vpop.eup %2835 }
 0x254   : > { %v562_v37 = vmul.f32 %v2836_v36, %v546_v18  ;;  %v1067_v36 = vld [vmem:[%s3654_s5 + $0x10] sm:$0xff] }
 0x256   : > { %2591 = vmatprep.mubr.msk.f32.mxu0 %vm536_vm1, %v562_v37  ;;  %v1066_v37 = vld [vmem:[%s3654_s5 + $0x8] sm:$0xff] }
 0x257   : > { %v2838_v38 = vpop.eup %2837 }
 0x258   : > { %v563_v39 = vmul.f32 %v2838_v38, %v547_v22  ;;  %v1065_v38 = vld [vmem:[%s3654_s5] sm:$0xff] }
 0x25a   : > { %2592 = vmatmul.mubr.msk.f32.vlgmr.msra.gmra.mxu0 %vm536_vm1, %v563_v39 }
 0x31a   : > { %v2593_v41 = vpop.f32.mrf.mxu0 }
 0x31b   : > { %v3315_v42 = vadd.f32 %v2593_v41, %v2396_v40 }
 0x31c   : > { %v647_v43 = vpop.f32.mrf.mxu0 }
 0x31d   : > { %v3317_v44 = vadd.f32 %v2396_v40, %v647_v43  ;;  %660 = vrot.lane.b32.xlu0 %v3315_v42, %s3077_s16 }
 0x31f   : > { %658 = vrot.lane.b32.xlu1 %v3317_v44, %s3077_s16  ;;  %2598 = vmatprep.mubr.msk.f32.mxu1 %vm662_vm2, %v3317_v44 }
 0x38f   : > { %v661_v45 = vpop.permute.xlu0 %660 }
 0x390   : > { %2594 = vmatprep.subr.msk.mxu1 %vm662_vm2, %v661_v45 }
 0x391   : > { %2595 = vmatpush3.xpose.msk.msra.mxu1 %vm662_vm2, %v661_v45  ;;  %v659_v46 = vpop.permute.xlu1 %658 }
 0x392   : > { %2596 = vmatprep.subr.msk.mxu1 %vm662_vm2, %v659_v46 }
 0x395   : > { %2597 = vmatpush3.xpose.msk.msra.mxu1 %vm662_vm2, %v659_v46  ;;  %v2413_v46 = vld [vmem:[#allocation7] ss:$0 sm:$0xff] }
 0x398   : > { %2599 = vmatmul.mubr.msk.f32.vlgmr.msra.gmra.mxu1 %vm662_vm2, %v3315_v42 }
 0x458   : > { %v2600_v47 = vpop.f32.mrf.mxu1 }
 0x459   : > { %v749_v48 = vsel %vm662_vm2, %v2600_v47, -inf }
 0x45a   : > { %750 = vmax.xlane.f32.xlu0 %v749_v48  ;;  %v737_v49 = vpop.f32.mrf.mxu1 }
 0x45b   : > { %v746_v50 = vsel %vm662_vm2, %v737_v49, -inf }
 0x45c   : > { %747 = vmax.xlane.f32.xlu1 %v746_v50 }
 0x4e3   : > { %v751_v51 = vpop.xlane.xlu0 %750 }
 0x4e4   : > { %v753_v52 = vsub.f32 %v2600_v47, %v751_v51 }
 0x4e5   : > { %v748_v53 = vpop.xlane.xlu1 %747 }
 0x4e6   : > { %v756_v54 = vmul.f32 1.442695, %v753_v52  ;;  %v752_v55 = vsub.f32 %v737_v49, %v748_v53 }
 0x4e8   : > { %2839 = vpow2.f32 %v756_v54  ;;  %v754_v56 = vmul.f32 1.442695, %v752_v55 }
 0x4ea   : > { %2841 = vpow2.f32 %v754_v56 }
 0x4f5   : > { %v2840_v57 = vpop.eup %2839 }
 0x4f6   : > { %v761_v58 = vsel %vm662_vm2, %v2840_v57, 0.0 }
 0x4f7   : > { %v2842_v59 = vpop.eup %2841  ;;  %762 = vadd.xlane.f32.xlu1 %v761_v58 }
 0x4f8   : > { %v758_v60 = vsel %vm662_vm2, %v2842_v59, 0.0 }
 0x4f9   : > { %759 = vadd.xlane.f32.xlu0 %v758_v60 }
 0x508   : > { %768 = vrot.lane.b32.xlu1 %v3317_v44, %s3078_s29 }
 0x50c   : > { %861 = vrot.lane.b32.xlu1 %v3315_v42, %s3079_s13 }
 0x50f   : > { %770 = vrot.lane.b32.xlu0 %v3315_v42, %s3078_s29 }
 0x510   : > { %859 = vrot.lane.b32.xlu1 %v3317_v44, %s3079_s13 }
 0x513   : > { %855 = vrot.lane.b32.xlu0 %v3317_v44, %s3080_s22 }
 0x514   : > { %857 = vrot.lane.b32.xlu1 %v3315_v42, %s3080_s22 }
 0x580   : > { %v763_v61 = vpop.xlane.xlu1 %762 }
 0x581   : > { %2843 = vrcp.f32 %v763_v61 }
 0x582   : > { %v760_v62 = vpop.xlane.xlu0 %759 }
 0x583   : > { %2845 = vrcp.f32 %v760_v62  ;;  %v1190_v62 = vld [vmem:[%s3656_s7 + $0x18] sm:$0xff] }
 0x584   : > { %v769_v63 = vpop.permute.xlu1 %768 }
 0x586   : > { %v771_v0 = vpop.permute.xlu0 %770 }
 0x587   : > { %2601 = vmatprep.subr.mxu0 %v771_v0 }
 0x588   : > { %2602 = vmatpush3.msra.mxu0 %v771_v0  ;;  %v862_v1 = vpop.permute.xlu1 %861  ;;  %v1188_v0 = vld [vmem:[%s3656_s7 + $0x8] sm:$0xff] }
 0x589   : > { %2603 = vmatprep.subr.mxu0 %v769_v63 }
 0x58a   : > { %2604 = vmatpush3.msra.mxu0 %v769_v63  ;;  %v856_v6 = vpop.permute.xlu0 %855  ;;  %v1189_v63 = vld [vmem:[%s3656_s7 + $0x10] sm:$0xff] }
 0x58b   : > { %2608 = vmatprep.subr.msk.mxu0 %vm662_vm2, %v862_v1 }
 0x58c   : > { %v860_v7 = vpop.permute.xlu1 %859 }
 0x58e   : > { %v2844_v2 = vpop.eup %2843 }
 0x58f   : > { %v767_v5 = vmul.f32 %v2844_v2, %v2840_v57 }
 0x590   : > { %v2846_v3 = vpop.eup %2845  ;;  %v858_v8 = vpop.permute.xlu1 %857 }
 0x591   : > { %v766_v4 = vmul.f32 %v2846_v3, %v2842_v59 }
 0x593   : > { %2605 = vmatprep.mubr.msk.f32.mxu0 %vm662_vm2, %v766_v4 }
 0x594   : > { %2606 = vmatmul.mubr.msk.f32.vlgmr.msra.gmra.mxu0 %vm662_vm2, %v767_v5 }
 0x595   : > { %2609 = vmatpush3.xpose.msk.msra.mxu0 %vm662_vm2, %v862_v1  ;;  %2612 = vmatprep.mubr.msk.f32.mxu0 %vm662_vm2, %v856_v6  ;;  %v1187_v1 = vld [vmem:[%s3656_s7] sm:$0xff] }
 0x596   : > { %2610 = vmatprep.subr.msk.mxu0 %vm662_vm2, %v860_v7 }
 0x599   : > { %2611 = vmatpush3.xpose.msk.msra.mxu0 %vm662_vm2, %v860_v7 }
 0x59a   : > { %2633 = vmatprep.subr.mxu0 %v1190_v62 }
 0x59c   : > { %2613 = vmatmul.mubr.msk.f32.vlgmr.msra.gmra.mxu0 %vm662_vm2, %v858_v8 }
 0x59d   : > { %2634 = vmatpush3.msra.mxu0 %v1190_v62  ;;  %v2423_v62 = vld [vmem:[%s3652_s3 + $0x38] sm:$0xff] }
 0x59e   : > { %2635 = vmatprep.subr.mxu0 %v1189_v63 }
 0x59f   : > { %2636 = vmatpush3.msra.mxu0 %v1189_v63  ;;  %v2422_v63 = vld [vmem:[%s3652_s3 + $0x30] sm:$0xff] }
 0x5a0   : > { %2637 = vmatprep.subr.mxu0 %v1188_v0 }
 0x5a1   : > { %2638 = vmatpush3.msra.mxu0 %v1188_v0  ;;  %v2421_v0 = vld [vmem:[%s3652_s3 + $0x28] sm:$0xff] }
 0x5a2   : > { %2639 = vmatprep.subr.mxu0 %v1187_v1 }
 0x5a3   : > { %2640 = vmatpush3.msra.mxu0 %v1187_v1  ;;  %v2420_v1 = vld [vmem:[%s3652_s3 + $0x20] sm:$0xff] }
 0x5a4   : > { %2663 = vmatprep.subr.mxu0 %v2423_v62 }
 0x654   : > { %v3355_v9 = vpop.f32.mrf.mxu0 }
 0x656   : > { %v846_v10 = vpop.f32.mrf.mxu0 }
 0x65c   : > { %v2614_v11 = vpop.f32.mrf.mxu0 }
 0x65d   : > { %v949_v14 = vsel %vm662_vm2, %v2614_v11, -inf }
 0x65e   : > { %950 = vmax.xlane.f32.xlu1 %v949_v14  ;;  %v937_v15 = vpop.f32.mrf.mxu0  ;;  %v1304_v14 = vld [vmem:[%s3658_s9 + $0x38] sm:$0xff] }
 0x65f   : > { %v946_v16 = vsel %vm662_vm2, %v937_v15, -inf }
 0x660   : > { %947 = vmax.xlane.f32.xlu0 %v946_v16  ;;  %v1302_v16 = vld [vmem:[%s3658_s9 + $0x28] sm:$0xff] }
 0x66f   : > { %968 = vrot.lane.b32.xlu1 %v3317_v44, %s3081_s12 }
 0x6e7   : > { %v951_v17 = vpop.xlane.xlu1 %950 }
 0x6e8   : > { %v953_v18 = vsub.f32 %v2614_v11, %v951_v17  ;;  %v1301_v17 = vld [vmem:[%s3658_s9 + $0x20] sm:$0xff] }
 0x6e9   : > { %v948_v19 = vpop.xlane.xlu0 %947 }
 0x6ea   : > { %v956_v20 = vmul.f32 1.442695, %v953_v18  ;;  %v952_v21 = vsub.f32 %v937_v15, %v948_v19  ;;  %v1303_v15 = vld [vmem:[%s3658_s9 + $0x30] sm:$0xff]  ;;  %v1300_v18 = vld [vmem:[%s3658_s9 + $0x18] sm:$0xff] }
 0x6eb   : > { %v969_v30 = vpop.permute.xlu1 %968  ;;  %v1299_v19 = vld [vmem:[%s3658_s9 + $0x10] sm:$0xff] }
 0x6ec   : > { %2847 = vpow2.f32 %v956_v20  ;;  %v954_v22 = vmul.f32 1.442695, %v952_v21  ;;  %v1298_v20 = vld [vmem:[%s3658_s9 + $0x8] sm:$0xff]  ;;  %v1297_v21 = vld [vmem:[%s3658_s9] sm:$0xff] }
 0x6ee   : > { %2849 = vpow2.f32 %v954_v22  ;;  %v2414_v22 = vld [vmem:[#allocation8] ss:$0 sm:$0xff] }
 0x6f9   : > { %v2848_v23 = vpop.eup %2847 }
 0x6fa   : > { %v961_v24 = vsel %vm662_vm2, %v2848_v23, 0.0 }
 0x6fb   : > { %v2850_v25 = vpop.eup %2849  ;;  %962 = vadd.xlane.f32.xlu0 %v961_v24 }
 0x6fc   : > { %v958_v26 = vsel %vm662_vm2, %v2850_v25, 0.0 }
 0x6ff   : > { %959 = vadd.xlane.f32.xlu0 %v958_v26 }
 0x715   : > { %970 = vrot.lane.b32.xlu0 %v3315_v42, %s3081_s12 }
 0x784   : > { %v963_v27 = vpop.xlane.xlu0 %962 }
 0x785   : > { %2851 = vrcp.f32 %v963_v27 }
 0x788   : > { %v960_v28 = vpop.xlane.xlu0 %959 }
 0x789   : > { %2853 = vrcp.f32 %v960_v28 }
 0x78c   : > { %v971_v29 = vpop.permute.xlu0 %970 }
 0x78d   : > { %2615 = vmatprep.subr.mxu1 %v971_v29 }
 0x78e   : > { %2616 = vmatpush3.msra.mxu1 %v971_v29 }
 0x78f   : > { %2617 = vmatprep.subr.mxu1 %v969_v30 }
 0x790   : > { %2618 = vmatpush3.msra.mxu1 %v969_v30 }
 0x791   : > { %2622 = vmatprep.subr.mxu1 %v1068_v35 }
 0x792   : > { %v2852_v31 = vpop.eup %2851 }
 0x793   : > { %v967_v34 = vmul.f32 %v2852_v31, %v2848_v23 }
 0x796   : > { %v2854_v32 = vpop.eup %2853 }
 0x797   : > { %v966_v33 = vmul.f32 %v2854_v32, %v2850_v25 }
 0x799   : > { %2619 = vmatprep.mubr.msk.f32.mxu1 %vm662_vm2, %v966_v33 }
 0x79a   : > { %2620 = vmatmul.mubr.msk.f32.vlgmr.msra.gmra.mxu1 %vm662_vm2, %v967_v34 }
 0x79b   : > { %2623 = vmatpush3.msra.mxu1 %v1068_v35 }
 0x79c   : > { %2624 = vmatprep.subr.mxu1 %v1067_v36 }
 0x79d   : > { %2625 = vmatpush3.msra.mxu1 %v1067_v36 }
 0x79e   : > { %2626 = vmatprep.subr.mxu1 %v1066_v37 }
 0x79f   : > { %2627 = vmatpush3.msra.mxu1 %v1066_v37 }
 0x7a0   : > { %2628 = vmatprep.subr.mxu1 %v1065_v38 }
 0x7a1   : > { %2629 = vmatpush3.msra.mxu1 %v1065_v38 }
 0x7a2   : > { %2644 = vmatprep.subr.mxu1 %v1304_v14 }
 0x85a   : > { %v2621_v39 = vpop.f32.mrf.mxu1 }
 0x85c   : > { %v1046_v40 = vpop.f32.mrf.mxu1 }
 0x85d   : > { %1057 = vrot.lane.b32.xlu1 %v1046_v40, %s3669_s25 }
 0x861   : > { %1059 = vrot.lane.b32.xlu1 %v2621_v39, %s3669_s25  ;;  %s2471_s25 = sshll.u32 %s3167_s21, 8  ;;  %s3609_s21 = scalar_lea.sflag [#allocation4], %s436_s26 }
 0x8cf   : > { %v1058_v41 = vpop.permute.xlu1 %1057 }
 0x8d0   : > { %v1063_v42 = vsel %vm662_vm2, %v846_v10, %v1058_v41 }
 0x8d1   : > { %2630 = vmatprep.mubr.msk.f32.mxu1 %vm536_vm1, %v1063_v42 }
 0x8d3   : > { %v1060_v43 = vpop.permute.xlu1 %1059 }
 0x8d4   : > { %v1064_v44 = vsel %vm662_vm2, %v3355_v9, %v1060_v43 }
 0x8d5   : > { %2631 = vmatmul.mubr.msk.f32.vlgmr.msra.gmra.mxu1 %vm536_vm1, %v1064_v44 }
 0x8d6   : > { %2645 = vmatpush3.msra.mxu1 %v1304_v14  ;;  %v2424_v14 = vld [vmem:[#allocation5 + $0x1] ss:$0 sm:$0xff] }
 0x8d7   : > { %2646 = vmatprep.subr.mxu1 %v1303_v15 }
 0x8d8   : > { %2647 = vmatpush3.msra.mxu1 %v1303_v15 }
 0x8d9   : > { %2648 = vmatprep.subr.mxu1 %v1302_v16 }
 0x8da   : > { %2649 = vmatpush3.msra.mxu1 %v1302_v16 }
 0x8db   : > { %2650 = vmatprep.subr.mxu1 %v1301_v17 }
 0x8dc   : > { %2651 = vmatpush3.msra.mxu1 %v1301_v17 }
 0x8dd   : > { %2652 = vmatprep.subr.mxu1 %v1300_v18 }
 0x8de   : > { %2653 = vmatpush3.msra.mxu1 %v1300_v18 }
 0x8df   : > { %2654 = vmatprep.subr.mxu1 %v1299_v19 }
 0x8e0   : > { %2655 = vmatpush3.msra.mxu1 %v1299_v19 }
 0x8e1   : > { %2656 = vmatprep.subr.mxu1 %v1298_v20 }
 0x8e2   : > { %2657 = vmatpush3.msra.mxu1 %v1298_v20 }
 0x8e3   : > { %2658 = vmatprep.subr.mxu1 %v1297_v21 }
 0x8e4   : > { %2659 = vmatpush3.msra.mxu1 %v1297_v21 }
 0x995   : > { %v2632_v45 = vpop.f32.mrf.mxu1 }
 0x996   : > { %v1151_v47 = vadd.f32 %v2632_v45, %v3291_v13  ;;  %v2417_v45 = vld [vmem:[%s3659_s10] ss:$0 sm:$0xff] }
 0x997   : > { %v1141_v48 = vpop.f32.mrf.mxu1 }
 0x998   : > { %v3387_v49 = vadd.f32 %v2413_v46, %v1151_v47  ;;  %v1150_v50 = vadd.f32 %v1141_v48, %v3289_v12 }
 0x99a   : > { %v3390_v51 = vadd.f32 %v2413_v46, %v1150_v50  ;;  %v1164_v52 = vsel %vm536_vm1, %v3387_v49, 0.0 }
 0x99b   : > { %1165 = vadd.xlane.f32.xlu1 %v1164_v52 }
 0x99c   : > { %v1161_v53 = vsel %vm536_vm1, %v3390_v51, 0.0 }
 0x99d   : > { %1162 = vadd.xlane.f32.xlu0 %v1161_v53 }
 0xa24   : > { %v1166_v54 = vpop.xlane.xlu1 %1165 }
 0xa25   : > { %v1168_v55 = vmul.f32 0.03125, %v1166_v54 }
 0xa26   : > { %v1163_v56 = vpop.xlane.xlu0 %1162 }
 0xa27   : > { %v1167_v57 = vmul.f32 0.03125, %v1163_v56  ;;  %v1170_v13 = vsub.f32 %v3387_v49, %v1168_v55 }
 0xa29   : > { %v1169_v58 = vsub.f32 %v3390_v51, %v1167_v57  ;;  %v1172_v60 = vmul.f32 %v1170_v13, %v1170_v13 }
 0xa2b   : > { %v1171_v59 = vmul.f32 %v1169_v58, %v1169_v58  ;;  %v1176_v61 = vsel %vm536_vm1, %v1172_v60, 0.0 }
 0xa2d   : > { %v1173_v12 = vsel %vm536_vm1, %v1171_v59, 0.0 }
 0xa2e   : > { %1174 = vadd.xlane.f32.xlu0 %v1173_v12 }
 0xa32   : > { %1177 = vadd.xlane.f32.xlu0 %v1176_v61 }
 0xab7   : > { %v1175_v2 = vpop.xlane.xlu0 %1174 }
 0xab8   : > { %v1179_v3 = vmul.f32 0.03125, %v1175_v2 }
 0xaba   : > { %v1181_v4 = vadd.f32 1e-06, %v1179_v3 }
 0xabb   : > { %v1178_v5 = vpop.xlane.xlu0 %1177 }
 0xabc   : > { %2855 = vrsqrt.f32 %v1181_v4  ;;  %v1180_v6 = vmul.f32 0.03125, %v1178_v5 }
 0xabe   : > { %v1182_v7 = vadd.f32 1e-06, %v1180_v6 }
 0xac0   : > { %2857 = vrsqrt.f32 %v1182_v7 }
 0xac9   : > { %v2856_v8 = vpop.eup %2855 }
 0xaca   : > { %v1185_v9 = vmul.f32 %v2856_v8, %v1169_v58 }
 0xacc   : > { %2641 = vmatprep.mubr.msk.f32.mxu0 %vm536_vm1, %v1185_v9 }
 0xacd   : > { %v2858_v10 = vpop.eup %2857 }
 0xace   : > { %v1186_v11 = vmul.f32 %v2858_v10, %v1170_v13 }
 0xad0   : > { %2642 = vmatmul.mubr.msk.f32.vlgmr.msra.gmra.mxu0 %vm536_vm1, %v1186_v11 }
 0xad1   : > { %2664 = vmatpush3.msra.mxu0 %v2423_v62 }
 0xad2   : > { %2665 = vmatprep.subr.mxu0 %v2422_v63 }
 0xad3   : > { %2666 = vmatpush3.msra.mxu0 %v2422_v63 }
 0xad4   : > { %2667 = vmatprep.subr.mxu0 %v2421_v0 }
 0xad5   : > { %2668 = vmatpush3.msra.mxu0 %v2421_v0 }
 0xad6   : > { %2669 = vmatprep.subr.mxu0 %v2420_v1 }
 0xad7   : > { %2670 = vmatpush3.msra.mxu0 %v2420_v1 }
 0xb90   : > { %v2643_v23 = vpop.f32.mrf.mxu0 }
 0xb91   : > { %v1276_v24 = vadd.f32 %v2643_v23, %v2414_v22 }
 0xb92   : > { %v1270_v25 = vpop.f32.mrf.mxu0 }
 0xb93   : > { %v1280_v26 = vmul.f32 %v1276_v24, %v1276_v24  ;;  %v1271_v27 = vadd.f32 %v2414_v22, %v1270_v25 }
 0xb95   : > { %v1282_v28 = vmul.f32 %v1280_v26, %v1276_v24  ;;  %v1279_v29 = vmul.f32 %v1271_v27, %v1271_v27 }
 0xb97   : > { %v1284_v30 = vmul.f32 0.044715, %v1282_v28  ;;  %v1281_v31 = vmul.f32 %v1279_v29, %v1271_v27 }
 0xb99   : > { %v1286_v32 = vadd.f32 %v1284_v30, %v1276_v24  ;;  %v1283_v33 = vmul.f32 0.044715, %v1281_v31 }
 0xb9b   : > { %v1288_v34 = vmul.f32 0.7978846, %v1286_v32  ;;  %v1285_v35 = vadd.f32 %v1283_v33, %v1271_v27 }
 0xb9d   : > { %2859 = vtanh.f32 %v1288_v34  ;;  %v1287_v36 = vmul.f32 0.7978846, %v1285_v35 }
 0xb9f   : > { %2861 = vtanh.f32 %v1287_v36 }
 0xbaa   : > { %v2860_v37 = vpop.eup %2859 }
 0xbab   : > { %v1292_v38 = vadd.f32 1.0, %v2860_v37 }
 0xbac   : > { %v2862_v39 = vpop.eup %2861 }
 0xbad   : > { %v1291_v40 = vadd.f32 1.0, %v2862_v39  ;;  %v1294_v41 = vmul.f32 0.5, %v1292_v38 }
 0xbaf   : > { %v1293_v42 = vmul.f32 0.5, %v1291_v40  ;;  %v1296_v44 = vmul.f32 %v1294_v41, %v1276_v24 }
 0xbb1   : > { %v1295_v43 = vmul.f32 %v1293_v42, %v1271_v27 }
 0xbb3   : > { %2660 = vmatprep.mubr.msk.f32.mxu1 %vm1312_vm3, %v1295_v43 }
 0xbb4   : > { %2661 = vmatmul.mubr.msk.f32.vlgmr.msra.gmra.mxu1 %vm1312_vm3, %v1296_v44 }
 0xc74   : > { %v2662_v46 = vpop.f32.mrf.mxu1 }
 0xc75   : > { %v1391_v47 = vadd.f32 %v2662_v46, %v2417_v45 }
 0xc76   : > { %v1385_v48 = vpop.f32.mrf.mxu1 }
 0xc77   : > { %v3444_v50 = vadd.f32 %v1391_v47, %v3387_v49  ;;  %v1386_v52 = vadd.f32 %v2417_v45, %v1385_v48 }
 0xc79   : > { %v3447_v53 = vadd.f32 %v1386_v52, %v3390_v51  ;;  %v1399_v54 = vsel %vm536_vm1, %v3444_v50, 0.0 }
 0xc7a   : > { %1400 = vadd.xlane.f32.xlu1 %v1399_v54 }
 0xc7b   : > { %v1396_v55 = vsel %vm536_vm1, %v3447_v53, 0.0 }
 0xc7c   : > { %1397 = vadd.xlane.f32.xlu0 %v1396_v55 }
 0xd03   : > { %v1401_v56 = vpop.xlane.xlu1 %1400 }
 0xd04   : > { %v1403_v57 = vmul.f32 0.03125, %v1401_v56 }
 0xd05   : > { %v1398_v13 = vpop.xlane.xlu0 %1397 }
 0xd06   : > { %v1405_v58 = vsub.f32 %v3444_v50, %v1403_v57  ;;  %v1402_v59 = vmul.f32 0.03125, %v1398_v13 }
 0xd08   : > { %v1404_v49 = vsub.f32 %v3447_v53, %v1402_v59  ;;  %v1407_v12 = vmul.f32 %v1405_v58, %v1405_v58 }
 0xd0a   : > { %v1411_v51 = vsel %vm536_vm1, %v1407_v12, 0.0  ;;  %v1406_v60 = vmul.f32 %v1404_v49, %v1404_v49 }
 0xd0b   : > { %1412 = vadd.xlane.f32.xlu1 %v1411_v51 }
 0xd0c   : > { %v1408_v61 = vsel %vm536_vm1, %v1406_v60, 0.0 }
 0xd0d   : > { %1409 = vadd.xlane.f32.xlu0 %v1408_v61 }
 0xd94   : > { %v1413_v2 = vpop.xlane.xlu1 %1412 }
 0xd95   : > { %v1415_v3 = vmul.f32 0.03125, %v1413_v2 }
 0xd96   : > { %v1410_v4 = vpop.xlane.xlu0 %1409 }
 0xd97   : > { %v1417_v5 = vadd.f32 1e-06, %v1415_v3  ;;  %v1414_v6 = vmul.f32 0.03125, %v1410_v4 }
 0xd99   : > { %v1416_v7 = vadd.f32 1e-06, %v1414_v6  ;;  %2863 = vrsqrt.f32 %v1417_v5  ;;  %v2442_v5 = vld [vmem:[%s3654_s5 + $0x38] sm:$0xff]  ;;  %v2441_v6 = vld [vmem:[%s3654_s5 + $0x30] sm:$0xff] }
 0xd9b   : > { %2865 = vrsqrt.f32 %v1416_v7  ;;  %v2440_v7 = vld [vmem:[%s3654_s5 + $0x28] sm:$0xff] }
 0xda6   : > { %v2864_v8 = vpop.eup %2863 }
 0xda7   : > { %v1421_v11 = vmul.f32 %v2864_v8, %v1405_v58  ;;  %v2439_v8 = vld [vmem:[%s3654_s5 + $0x20] sm:$0xff] }
 0xda8   : > { %v2866_v9 = vpop.eup %2865 }
 0xda9   : > { %v1420_v10 = vmul.f32 %v2866_v9, %v1404_v49 }
 0xdab   : > { %2671 = vmatprep.mubr.msk.f32.mxu0 %vm536_vm1, %v1420_v10 }
 0xdac   : > { %2672 = vmatmul.mubr.msk.f32.vlgmr.msra.gmra.mxu0 %vm536_vm1, %v1421_v11 }
 0xe6c   : > { %v2673_v15 = vpop.f32.mrf.mxu0 }
 0xe6d   : > { %v3471_v16 = vadd.f32 %v2673_v15, %v2424_v14 }
 0xe6e   : > { %v1507_v17 = vpop.f32.mrf.mxu0 }
 0xe6f   : > { %v3473_v18 = vadd.f32 %v2424_v14, %v1507_v17  ;;  %1520 = vrot.lane.b32.xlu0 %v3471_v16, %s3077_s16 }
 0xe71   : > { %1518 = vrot.lane.b32.xlu1 %v3473_v18, %s3077_s16  ;;  %2678 = vmatprep.mubr.msk.f32.mxu0 %vm662_vm2, %v3473_v18 }
 0xe73   : > { %1714 = vrot.lane.b32.xlu0 %v3473_v18, %s3080_s22 }
 0xe75   : > { %1720 = vrot.lane.b32.xlu1 %v3471_v16, %s3079_s13 }
 0xe79   : > { %1718 = vrot.lane.b32.xlu1 %v3473_v18, %s3079_s13 }
 0xe7d   : > { %1716 = vrot.lane.b32.xlu1 %v3471_v16, %s3080_s22  ;;  %s3602_s22 = scalar_lea.hbm %s3660_s11, %s2471_s25 }
 0xee1   : > { %v1521_v19 = vpop.permute.xlu0 %1520 }
 0xee2   : > { %2674 = vmatprep.subr.msk.mxu0 %vm662_vm2, %v1521_v19 }
 0xee3   : > { %2675 = vmatpush3.xpose.msk.msra.mxu0 %vm662_vm2, %v1521_v19  ;;  %v1519_v20 = vpop.permute.xlu1 %1518 }
 0xee4   : > { %2676 = vmatprep.subr.msk.mxu0 %vm662_vm2, %v1519_v20 }
 0xee5   : > { %v1715_v22 = vpop.permute.xlu0 %1714 }
 0xee7   : > { %2677 = vmatpush3.xpose.msk.msra.mxu0 %vm662_vm2, %v1519_v20  ;;  %v1721_v21 = vpop.permute.xlu1 %1720  ;;  %v2445_v20 = vld [vmem:[#allocation7 + $0x1] ss:$0 sm:$0xff] }
 0xee8   : > { %2688 = vmatprep.subr.msk.mxu0 %vm662_vm2, %v1721_v21 }
 0xeea   : > { %2679 = vmatmul.mubr.msk.f32.vlgmr.msra.gmra.mxu0 %vm662_vm2, %v3471_v16 }
 0xeeb   : > { %v1719_v23 = vpop.permute.xlu1 %1718  ;;  %2689 = vmatpush3.xpose.msk.msra.mxu0 %vm662_vm2, %v1721_v21  ;;  %2692 = vmatprep.mubr.msk.f32.mxu0 %vm662_vm2, %v1715_v22 }
 0xeec   : > { %2690 = vmatprep.subr.msk.mxu0 %vm662_vm2, %v1719_v23 }
 0xeef   : > { %2691 = vmatpush3.xpose.msk.msra.mxu0 %vm662_vm2, %v1719_v23  ;;  %v1717_v24 = vpop.permute.xlu1 %1716 }
 0xef2   : > { %2693 = vmatmul.mubr.msk.f32.vlgmr.msra.gmra.mxu0 %vm662_vm2, %v1717_v24 }
 0xfaa   : > { %v2680_v25 = vpop.f32.mrf.mxu0 }
 0xfab   : > { %v1608_v26 = vsel %vm662_vm2, %v2680_v25, -inf }
 0xfac   : > { %1609 = vmax.xlane.f32.xlu1 %v1608_v26  ;;  %v1596_v27 = vpop.f32.mrf.mxu0 }
 0xfad   : > { %v1605_v28 = vsel %vm662_vm2, %v1596_v27, -inf }
 0xfae   : > { %1606 = vmax.xlane.f32.xlu0 %v1605_v28 }
 0xfb2   : > { %v2694_v29 = vpop.f32.mrf.mxu0 }
 0xfb3   : > { %v1808_v32 = vsel %vm662_vm2, %v2694_v29, -inf }
 0xfb4   : > { %v1796_v30 = vpop.f32.mrf.mxu0 }
 0xfb5   : > { %v1805_v31 = vsel %vm662_vm2, %v1796_v30, -inf }
 0xfb6   : > { %1806 = vmax.xlane.f32.xlu0 %v1805_v31 }
 0xfba   : > { %1809 = vmax.xlane.f32.xlu0 %v1808_v32 }
0x1035   : > { %v1610_v33 = vpop.xlane.xlu1 %1609 }
0x1036   : > { %v1612_v34 = vsub.f32 %v2680_v25, %v1610_v33 }
0x1037   : > { %v1607_v35 = vpop.xlane.xlu0 %1606 }
0x1038   : > { %v1615_v36 = vmul.f32 1.442695, %v1612_v34  ;;  %v1611_v37 = vsub.f32 %v1596_v27, %v1607_v35 }
0x103a   : > { %2867 = vpow2.f32 %v1615_v36  ;;  %v1613_v38 = vmul.f32 1.442695, %v1611_v37  ;;  %v2449_v36 = vld [vmem:[%s3656_s7 + $0x38] sm:$0xff]  ;;  %v2448_v37 = vld [vmem:[%s3656_s7 + $0x30] sm:$0xff] }
0x103b   : > { %2713 = vmatprep.subr.mxu0 %v2449_v36 }
0x103c   : > { %2869 = vpow2.f32 %v1613_v38  ;;  %2714 = vmatpush3.msra.mxu0 %v2449_v36  ;;  %v2447_v38 = vld [vmem:[%s3656_s7 + $0x28] sm:$0xff] }
0x103d   : > { %2715 = vmatprep.subr.mxu0 %v2448_v37 }
0x103e   : > { %2716 = vmatpush3.msra.mxu0 %v2448_v37 }
0x103f   : > { %v1807_v39 = vpop.xlane.xlu0 %1806  ;;  %2717 = vmatprep.subr.mxu0 %v2447_v38 }
0x1040   : > { %v1811_v40 = vsub.f32 %v1796_v30, %v1807_v39  ;;  %2718 = vmatpush3.msra.mxu0 %v2447_v38  ;;  %v2446_v39 = vld [vmem:[%s3656_s7 + $0x20] sm:$0xff] }
0x1041   : > { %2719 = vmatprep.subr.mxu0 %v2446_v39 }
0x1042   : > { %v1813_v41 = vmul.f32 1.442695, %v1811_v40  ;;  %2720 = vmatpush3.msra.mxu0 %v2446_v39 }
0x1043   : > { %v1810_v42 = vpop.xlane.xlu0 %1809 }
0x1044   : > { %2871 = vpow2.f32 %v1813_v41  ;;  %v1812_v43 = vsub.f32 %v2694_v29, %v1810_v42 }
0x1046   : > { %v1815_v44 = vmul.f32 1.442695, %v1812_v43 }
0x1047   : > { %v2868_v45 = vpop.eup %2867 }
0x1048   : > { %2873 = vpow2.f32 %v1815_v44  ;;  %v1620_v46 = vsel %vm662_vm2, %v2868_v45, 0.0 }
0x1049   : > { %v2870_v47 = vpop.eup %2869  ;;  %1621 = vadd.xlane.f32.xlu1 %v1620_v46 }
0x104a   : > { %v1617_v48 = vsel %vm662_vm2, %v2870_v47, 0.0 }
0x104b   : > { %1618 = vadd.xlane.f32.xlu0 %v1617_v48 }
0x1051   : > { %v2872_v52 = vpop.eup %2871 }
0x1052   : > { %v1817_v54 = vsel %vm662_vm2, %v2872_v52, 0.0 }
0x1053   : > { %1818 = vadd.xlane.f32.xlu0 %v1817_v54  ;;  %v2460_v54 = vld [vmem:[%s3658_s9 + $0x78] sm:$0xff] }
0x1055   : > { %v2874_v55 = vpop.eup %2873 }
0x1056   : > { %v1820_v56 = vsel %vm662_vm2, %v2874_v55, 0.0 }
0x1057   : > { %1821 = vadd.xlane.f32.xlu1 %v1820_v56  ;;  %v2458_v56 = vld [vmem:[%s3658_s9 + $0x68] sm:$0xff] }
0x1068   : > { %1627 = vrot.lane.b32.xlu1 %v3473_v18, %s3078_s29 }
0x1069   : > { %1629 = vrot.lane.b32.xlu0 %v3471_v16, %s3078_s29 }
0x106c   : > { %1829 = vrot.lane.b32.xlu1 %v3471_v16, %s3081_s12 }
0x1070   : > { %1827 = vrot.lane.b32.xlu1 %v3473_v18, %s3081_s12 }
0x10d2   : > { %v1622_v57 = vpop.xlane.xlu1 %1621 }
0x10d3   : > { %2875 = vrcp.f32 %v1622_v57  ;;  %v2457_v57 = vld [vmem:[%s3658_s9 + $0x60] sm:$0xff] }
0x10d4   : > { %v1619_v13 = vpop.xlane.xlu0 %1618 }
0x10d5   : > { %2877 = vrcp.f32 %v1619_v13  ;;  %v2456_v13 = vld [vmem:[%s3658_s9 + $0x58] sm:$0xff] }
0x10dc   : > { %v1819_v58 = vpop.xlane.xlu0 %1818 }
0x10dd   : > { %2879 = vrcp.f32 %v1819_v58  ;;  %v2455_v58 = vld [vmem:[%s3658_s9 + $0x50] sm:$0xff] }
0x10e0   : > { %v1822_v59 = vpop.xlane.xlu1 %1821  ;;  %v1630_v49 = vpop.permute.xlu0 %1629 }
0x10e1   : > { %v2876_v12 = vpop.eup %2875  ;;  %2881 = vrcp.f32 %v1822_v59  ;;  %2681 = vmatprep.subr.mxu1 %v1630_v49  ;;  %v2454_v59 = vld [vmem:[%s3658_s9 + $0x48] sm:$0xff] }
0x10e2   : > { %v2878_v51 = vpop.eup %2877  ;;  %2682 = vmatpush3.msra.mxu1 %v1630_v49  ;;  %v1626_v62 = vmul.f32 %v2876_v12, %v2868_v45  ;;  %v2453_v49 = vld [vmem:[%s3658_s9 + $0x40] sm:$0xff]  ;;  %v2450_v12 = vld [vmem:[#allocation8 + $0x1] ss:$0 sm:$0xff] }
0x10e3   : > { %v1625_v60 = vmul.f32 %v2878_v51, %v2870_v47 }
0x10e4   : > { %v1628_v61 = vpop.permute.xlu1 %1627 }
0x10e5   : > { %2683 = vmatprep.subr.mxu1 %v1628_v61  ;;  %2685 = vmatprep.mubr.msk.f32.mxu1 %vm662_vm2, %v1625_v60 }
0x10e6   : > { %2684 = vmatpush3.msra.mxu1 %v1628_v61 }
0x10e7   : > { %2686 = vmatmul.mubr.msk.f32.vlgmr.msra.gmra.mxu1 %vm662_vm2, %v1626_v62 }
0x10e8   : > { %v1830_v63 = vpop.permute.xlu1 %1829 }
0x10e9   : > { %2695 = vmatprep.subr.mxu1 %v1830_v63 }
0x10ea   : > { %v2880_v0 = vpop.eup %2879  ;;  %2696 = vmatpush3.msra.mxu1 %v1830_v63 }
0x10eb   : > { %v1825_v1 = vmul.f32 %v2880_v0, %v2872_v52 }
0x10ec   : > { %v1828_v2 = vpop.permute.xlu1 %1827 }
0x10ed   : > { %2697 = vmatprep.subr.mxu1 %v1828_v2  ;;  %2699 = vmatprep.mubr.msk.f32.mxu1 %vm662_vm2, %v1825_v1 }
0x10ee   : > { %v2882_v3 = vpop.eup %2881  ;;  %2698 = vmatpush3.msra.mxu1 %v1828_v2 }
0x10ef   : > { %v1826_v4 = vmul.f32 %v2882_v3, %v2874_v55  ;;  %2702 = vmatprep.subr.mxu1 %v2442_v5  ;;  %v2459_v55 = vld [vmem:[%s3658_s9 + $0x70] sm:$0xff] }
0x10f1   : > { %2700 = vmatmul.mubr.msk.f32.vlgmr.msra.gmra.mxu1 %vm662_vm2, %v1826_v4 }
0x10f2   : > { %2703 = vmatpush3.msra.mxu1 %v2442_v5 }
0x10f3   : > { %2704 = vmatprep.subr.mxu1 %v2441_v6 }
0x10f4   : > { %2705 = vmatpush3.msra.mxu1 %v2441_v6 }
0x10f5   : > { %2706 = vmatprep.subr.mxu1 %v2440_v7 }
0x10f6   : > { %2707 = vmatpush3.msra.mxu1 %v2440_v7 }
0x10f7   : > { %2708 = vmatprep.subr.mxu1 %v2439_v8 }
0x10f8   : > { %2709 = vmatpush3.msra.mxu1 %v2439_v8 }
0x10f9   : > { %2724 = vmatprep.subr.mxu1 %v2460_v54 }
0x11a7   : > { %v2687_v9 = vpop.f32.mrf.mxu1 }
0x11a9   : > { %v1705_v10 = vpop.f32.mrf.mxu1 }
0x11b1   : > { %v2701_v11 = vpop.f32.mrf.mxu1 }
0x11b2   : > { %1918 = vrot.lane.b32.xlu1 %v2701_v11, %s3686_s15 }
0x11b3   : > { %v1905_v14 = vpop.f32.mrf.mxu1 }
0x11b4   : > { %1916 = vrot.lane.b32.xlu0 %v1905_v14, %s3686_s15  ;;  %s2391_s15 = sshll.u32 %s436_s26, 4 }
0x11b5   : > { %s438_s30 = scalar_lea.vmem [#allocation10], %s2391_s15  ;;  %s3001_s15 = scalar_lea.vmem %s3000_s23, 512 }
0x11b6   : > { %s2276_s16 = sshll.u32 %s438_s30, 4  ;;  %s3604_s16 = int_to_ptr.vmem [resolvable:$true] %s2276_s16 }
0x11b7   : > { %s2995_s12 = scalar_lea.vmem %s3604_s16, 256  ;;  %p3002_p0 = scmp.lt.s32.totalorder %s3604_s16, %s3000_s23 }
0x11b8   : > { %p2996_p8 = scmp.ne.s32.totalorder %s3604_s16, %s2995_s12  ;;  %p3003_p2 = scmp.lt.s32.totalorder %s3001_s15, %s2995_s12 }
0x11ba   : > { %p2997_p11 = pnand %p2996_p8, %p3184_p5  ;;  %p3004_p13 = por %p3003_p2, %p3002_p0 }
0x11bc   : > { %p2998_p1 = pneg %p2997_p11 }
0x11be   : > { %p3005_p3 = pnand %p3004_p13, %p2998_p1 }
0x1224   : > { %v1919_v15 = vpop.permute.xlu1 %1918 }
0x1225   : > { %v1923_v18 = vsel %vm662_vm2, %v2687_v9, %v1919_v15 }
0x1226   : > { %v1917_v16 = vpop.permute.xlu0 %1916 }
0x1227   : > { %v1922_v17 = vsel %vm662_vm2, %v1705_v10, %v1917_v16 }
0x1228   : > { %2710 = vmatprep.mubr.msk.f32.mxu1 %vm536_vm1, %v1922_v17 }
0x1229   : > { %2711 = vmatmul.mubr.msk.f32.vlgmr.msra.gmra.mxu1 %vm536_vm1, %v1923_v18 }
0x122a   : > { %2725 = vmatpush3.msra.mxu1 %v2460_v54 }
0x122b   : > { %2726 = vmatprep.subr.mxu1 %v2459_v55 }
0x122c   : > { %2727 = vmatpush3.msra.mxu1 %v2459_v55 }
0x122d   : > { %2728 = vmatprep.subr.mxu1 %v2458_v56 }
0x122e   : > { %2729 = vmatpush3.msra.mxu1 %v2458_v56 }
0x122f   : > { %2730 = vmatprep.subr.mxu1 %v2457_v57 }
0x1230   : > { %2731 = vmatpush3.msra.mxu1 %v2457_v57 }
0x1231   : > { %2732 = vmatprep.subr.mxu1 %v2456_v13 }
0x1232   : > { %2733 = vmatpush3.msra.mxu1 %v2456_v13 }
0x1233   : > { %2734 = vmatprep.subr.mxu1 %v2455_v58 }
0x1234   : > { %2735 = vmatpush3.msra.mxu1 %v2455_v58 }
0x1235   : > { %2736 = vmatprep.subr.mxu1 %v2454_v59 }
0x1236   : > { %2737 = vmatpush3.msra.mxu1 %v2454_v59 }
0x1237   : > { %2738 = vmatprep.subr.mxu1 %v2453_v49 }
0x1238   : > { %2739 = vmatpush3.msra.mxu1 %v2453_v49 }
0x12e9   : > { %v2712_v19 = vpop.f32.mrf.mxu1 }
0x12ea   : > { %v2011_v21 = vadd.f32 %v2712_v19, %v3444_v50  ;;  %v2462_v19 = vld [vmem:[%s3659_s10 + $0x1] ss:$0 sm:$0xff] }
0x12eb   : > { %v2001_v22 = vpop.f32.mrf.mxu1 }
0x12ec   : > { %v3540_v23 = vadd.f32 %v2445_v20, %v2011_v21  ;;  %v2010_v24 = vadd.f32 %v2001_v22, %v3447_v53 }
0x12ee   : > { %v3543_v25 = vadd.f32 %v2445_v20, %v2010_v24  ;;  %v2025_v26 = vsel %vm536_vm1, %v3540_v23, 0.0 }
0x12ef   : > { %2026 = vadd.xlane.f32.xlu1 %v2025_v26 }
0x12f0   : > { %v2022_v27 = vsel %vm536_vm1, %v3543_v25, 0.0 }
0x12f1   : > { %2023 = vadd.xlane.f32.xlu0 %v2022_v27 }
0x1378   : > { %v2027_v28 = vpop.xlane.xlu1 %2026 }
0x1379   : > { %v2029_v29 = vmul.f32 0.03125, %v2027_v28 }
0x137a   : > { %v2024_v30 = vpop.xlane.xlu0 %2023 }
0x137b   : > { %v2028_v31 = vmul.f32 0.03125, %v2024_v30  ;;  %v2031_v50 = vsub.f32 %v3540_v23, %v2029_v29 }
0x137d   : > { %v2030_v32 = vsub.f32 %v3543_v25, %v2028_v31  ;;  %v2033_v34 = vmul.f32 %v2031_v50, %v2031_v50 }
0x137f   : > { %v2032_v33 = vmul.f32 %v2030_v32, %v2030_v32  ;;  %v2037_v35 = vsel %vm536_vm1, %v2033_v34, 0.0 }
0x1381   : > { %v2034_v53 = vsel %vm536_vm1, %v2032_v33, 0.0 }
0x1382   : > { %2035 = vadd.xlane.f32.xlu0 %v2034_v53 }
0x1386   : > { %2038 = vadd.xlane.f32.xlu0 %v2037_v35 }
0x140b   : > { %v2036_v40 = vpop.xlane.xlu0 %2035 }
0x140c   : > { %v2040_v41 = vmul.f32 0.03125, %v2036_v40 }
0x140e   : > { %v2042_v42 = vadd.f32 1e-06, %v2040_v41 }
0x140f   : > { %v2039_v43 = vpop.xlane.xlu0 %2038 }
0x1410   : > { %2883 = vrsqrt.f32 %v2042_v42  ;;  %v2041_v44 = vmul.f32 0.03125, %v2039_v43 }
0x1412   : > { %v2043_v45 = vadd.f32 1e-06, %v2041_v44 }
0x1414   : > { %2885 = vrsqrt.f32 %v2043_v45 }
0x141d   : > { %v2884_v46 = vpop.eup %2883 }
0x141e   : > { %v2046_v47 = vmul.f32 %v2884_v46, %v2030_v32 }
0x1420   : > { %2721 = vmatprep.mubr.msk.f32.mxu0 %vm536_vm1, %v2046_v47 }
0x1421   : > { %v2886_v48 = vpop.eup %2885 }
0x1422   : > { %v2047_v52 = vmul.f32 %v2886_v48, %v2031_v50 }
0x1424   : > { %2722 = vmatmul.mubr.msk.f32.vlgmr.msra.gmra.mxu0 %vm536_vm1, %v2047_v52 }
0x14e4   : > { %v2723_v51 = vpop.f32.mrf.mxu0 }
0x14e5   : > { %v2139_v60 = vadd.f32 %v2723_v51, %v2450_v12 }
0x14e6   : > { %v2133_v61 = vpop.f32.mrf.mxu0 }
0x14e7   : > { %v2143_v62 = vmul.f32 %v2139_v60, %v2139_v60  ;;  %v2134_v63 = vadd.f32 %v2450_v12, %v2133_v61 }
0x14e9   : > { %v2145_v0 = vmul.f32 %v2143_v62, %v2139_v60  ;;  %v2142_v1 = vmul.f32 %v2134_v63, %v2134_v63 }
0x14eb   : > { %v2147_v2 = vmul.f32 0.044715, %v2145_v0  ;;  %v2144_v3 = vmul.f32 %v2142_v1, %v2134_v63 }
0x14ed   : > { %v2149_v4 = vadd.f32 %v2147_v2, %v2139_v60  ;;  %v2146_v5 = vmul.f32 0.044715, %v2144_v3 }
0x14ef   : > { %v2151_v6 = vmul.f32 0.7978846, %v2149_v4  ;;  %v2148_v7 = vadd.f32 %v2146_v5, %v2134_v63 }
0x14f1   : > { %2887 = vtanh.f32 %v2151_v6  ;;  %v2150_v8 = vmul.f32 0.7978846, %v2148_v7 }
0x14f3   : > { %2889 = vtanh.f32 %v2150_v8 }
0x14fe   : > { %v2888_v9 = vpop.eup %2887 }
0x14ff   : > { %v2155_v10 = vadd.f32 1.0, %v2888_v9 }
0x1500   : > { %v2890_v11 = vpop.eup %2889 }
0x1501   : > { %v2154_v14 = vadd.f32 1.0, %v2890_v11  ;;  %v2157_v15 = vmul.f32 0.5, %v2155_v10 }
0x1503   : > { %v2156_v16 = vmul.f32 0.5, %v2154_v14  ;;  %v2159_v18 = vmul.f32 %v2157_v15, %v2139_v60 }
0x1505   : > { %v2158_v17 = vmul.f32 %v2156_v16, %v2134_v63 }
0x1507   : > { %2740 = vmatprep.mubr.msk.f32.mxu1 %vm1312_vm3, %v2158_v17 }
0x1508   : > { %2741 = vmatmul.mubr.msk.f32.vlgmr.msra.gmra.mxu1 %vm1312_vm3, %v2159_v18 }
0x15c8   : > { %v2742_v20 = vpop.f32.mrf.mxu1 }
0x15c9   : > { %v2255_v21 = vadd.f32 %v2742_v20, %v2462_v19 }
0x15ca   : > { %v2249_v22 = vpop.f32.mrf.mxu1 }
0x15cb   : > { %v2259_v24 = vadd.f32 %v2255_v21, %v3540_v23  ;;  %v2250_v26 = vadd.f32 %v2462_v19, %v2249_v22 }
0x15cd   : > { %2261 = vst.msk [vmem:[%s438_s30 + $0x8] sm:$0xff] %vm536_vm1, %v2259_v24  ;;  %v2258_v27 = vadd.f32 %v2250_v26, %v3543_v25 }
0x15cf   : > { %2260 = vst.msk [vmem:[%s438_s30] sm:$0xff] %vm536_vm1, %v2258_v27 }
0x15d0   : > { %3008 = shalt.err (!%p3005_p3)
}
0x15d1   : > { %s3009_s26 = scalar_lea.hbm %s3602_s22, 256  ;;  %s3013_s25 = scalar_lea.hbm %s3660_s11, 512 }
0x15d2   : > { %p3010_p9 = scmp.ne.s32.totalorder %s3602_s22, %s3009_s26  ;;  %p3014_p12 = scmp.lt.s32.totalorder %s3602_s22, %s3660_s11 }
0x15d3   : > { %p3015_p10 = scmp.lt.s32.totalorder %s3013_s25, %s3009_s26 }
0x15d4   : > { %p3011_p4 = pnand %p3010_p9, %p3184_p5 }
0x15d5   : > { %p3016_p8 = por %p3015_p10, %p3014_p12 }
0x15d6   : > { %p3012_p7 = pneg %p3011_p4 }
0x15d8   : > { %p3017_p11 = pnand %p3016_p8, %p3012_p7 }
0x15da   : > { %3020 = shalt.err (!%p3017_p11)
}
0x15db   : > { %s3084_s13 = smov 128   ;;  %s3085_s12 = smov 8  }
0x15dc   : > { %2759 = dma.vmem_to_hbm [thread:$0]  (%p3184_p5), %s3604_s16, 256, %s3602_s22, %s3609_s21, %s3084_s13, %s3084_s13, %s3085_s12  }
0x15dd PF: > { %p2786_p1 = scmp.ge.s32.totalorder %s3067_s20, 2  ;;  %s2291_s19 = sand.u32 1, %s3055_s17  }
0x15de   : > { %s2292_s23 = scalar_lea.sflag [#allocation4], %s2291_s19 }
0x15df   : > { %p2775_p0 = pnand %p2786_p1, %p3188_p6 }
0x15e1   : > { %p2776_p2 = pneg %p2775_p0 }
0x15e3   : > { %3050 = dma.done.wait (%p2776_p2), %s2292_s23, 256  }
0x15e4   : > { %3052 = vsyncadd (%p2776_p2), %s2292_s23, 4294967040  ;;  %s3687_s20 = sld [smem:[#allocation16_spill]]  ;;  %s3690_s17 = smov %s3059_s18 }
0x15e5   : > { %s3688_s15 = sld [smem:[#allocation15_spill]] }
0x15e6   : > { %s3689_s19 = sld [smem:[#allocation17_spill]] }
0x15ea   : > { %p24_p13 = scmp.ge.s32.totalorder %s3687_s20, 4  }
0x15eb   : > { %s3691_s18 = smov %s3688_s15 }
0x15ec   :  { %26 = sbr.rel (!%p24_p13) target bundleno = 6 (0x6), region = 124 }
0x15f1   :  { %2297 = vsyncpa [#allocation3], 1 }
0x15f2   :  { %2299 = vsyncpa [#allocation3 + $0x1], 1 }
0x15f3   :  { %2300 = vsyncpa [#allocation6], 1 }
0x15f4   :  { %2301 = vsyncpa [#allocation9], 1 }
0x15f5   :  { %2302 = vsyncpa [#allocation4], 1 }
0x15f6   :  { %2304 = vsyncpa [#allocation4 + $0x1], 1 }

</bundles_post_ra>
